<compile_context>
chip_gen: v7x
topology: tpu7x:2x2x1
jax: 0.10.0
libtpu: 0.0.40
codegen_flags: <defaults>
</compile_context>

<pallas_src>
import math

import jax
import jax.numpy as jnp
from jax.experimental import pallas as pl
from jax.experimental.pallas import tpu as pltpu

B = 2            # batch
T = 16           # sequence length
D = 128          # model dim (multiple of 128 -> lane-dense I/O)
H = 8            # heads (PyTorch default num_heads=8)
DH = D // H      # head dim
LN_EPS = 1e-5
SCALE = 1.0 / math.sqrt(DH)


def mhsa_kernel(x_ref, w_ref, p_ref, o_ref):
    """Fused MHSA + residual + LayerNorm, whole problem in one grid step."""
    b, t, d = x_ref.shape
    x = x_ref[...]                      # (B, T, D), also the residual
    x2d = x.reshape(b * t, d)           # (B*T, D): rows on sublanes, D on lanes

    # Packed weights: [W_in (D,3D) | W_out (D,D)] along lanes (128-aligned).
    w_in = w_ref[:, :3 * d]             # (D, 3D)
    w_out = w_ref[:, 3 * d:]            # (D, D)
    # Packed (1, D) rows: b_q, b_k, b_v, b_out, ln_w, ln_b.
    pr = p_ref[...]
    b_q, b_k, b_v = pr[0:1, :], pr[1:2, :], pr[2:3, :]
    b_o, ln_w, ln_b = pr[3:4, :], pr[4:5, :], pr[5:6, :]

    # Fused QKV projection: one MXU matmul, N = 3D = 384 output lanes.
    qkv = jnp.dot(x2d, w_in, preferred_element_type=jnp.float32)   # (B*T, 3D)
    q = ((qkv[:, :d] + b_q) * SCALE).reshape(b, t, d)
    k = (qkv[:, d:2 * d] + b_k).reshape(b, t, d)
    v = (qkv[:, 2 * d:] + b_v).reshape(b, t, d)

    # Per-head scaled-dot-product attention (static unroll over H heads).
    ctx_heads = []
    for h in range(H):
        lo, hi = h * DH, (h + 1) * DH
        qh, kh, vh = q[:, :, lo:hi], k[:, :, lo:hi], v[:, :, lo:hi]
        s = jnp.einsum('btd,bsd->bts', qh, kh,
                       preferred_element_type=jnp.float32)          # (B, T, T)
        s = s - jnp.max(s, axis=-1, keepdims=True)
        p = jnp.exp(s)
        p = p / jnp.sum(p, axis=-1, keepdims=True)
        ctx_heads.append(jnp.einsum('bts,bsd->btd', p, vh,
                                    preferred_element_type=jnp.float32))
    ctx2d = jnp.concatenate(ctx_heads, axis=-1).reshape(b * t, d)    # (B*T, D)

    # Output projection (dropout == identity in eval), residual, LayerNorm.
    out = jnp.dot(ctx2d, w_out, preferred_element_type=jnp.float32) + b_o
    r = out + x2d
    mu = jnp.mean(r, axis=-1, keepdims=True)
    var = jnp.mean((r - mu) * (r - mu), axis=-1, keepdims=True)
    y = (r - mu) * jax.lax.rsqrt(var + LN_EPS) * ln_w + ln_b
    o_ref[...] = y.reshape(b, t, d).astype(o_ref.dtype)


def mhsa_forward(x, w_all, p_rows):
    b, t, d = x.shape
    return pl.pallas_call(
        mhsa_kernel,
        out_shape=jax.ShapeDtypeStruct((b, t, d), x.dtype),
        grid_spec=pltpu.PrefetchScalarGridSpec(
            num_scalar_prefetch=0,
            grid=(1,),                                  # single step: no per-batch grid
            in_specs=[
                pl.BlockSpec((b, t, d), lambda i: (0, 0, 0)),
                pl.BlockSpec(w_all.shape, lambda i: (0, 0)),
                pl.BlockSpec(p_rows.shape, lambda i: (0, 0)),
            ],
            out_specs=pl.BlockSpec((b, t, d), lambda i: (0, 0, 0)),
        ),
        compiler_params=pltpu.CompilerParams(
            dimension_semantics=("arbitrary",)),
    )(x, w_all, p_rows)


def ref_forward(x, w_in, b_in, w_out, b_out, ln_w, ln_b):
    """Pure-JAX reference with PyTorch nn.MultiheadAttention (eval) semantics."""
    b, t, d = x.shape
    qkv = x @ w_in.T + b_in
    q, k, v = qkv[..., :d], qkv[..., d:2 * d], qkv[..., 2 * d:]
    q = q.reshape(b, t, H, DH) * SCALE
    k = k.reshape(b, t, H, DH)
    v = v.reshape(b, t, H, DH)
    s = jnp.einsum('bthd,bshd->bhts', q, k)
    p = jax.nn.softmax(s, axis=-1)
    ctx = jnp.einsum('bhts,bshd->bthd', p, v).reshape(b, t, d)
    out = ctx @ w_out.T + b_out
    r = out + x
    mu = r.mean(-1, keepdims=True)
    var = ((r - mu) ** 2).mean(-1, keepdims=True)
    return (r - mu) * jax.lax.rsqrt(var + LN_EPS) * ln_w + ln_b


def make_params():
    key = jax.random.PRNGKey(0)
    ks = jax.random.split(key, 7)

    def init(k, shape, scale):
        return scale * jax.random.normal(k, shape, jnp.float32)

    w_scale = 1.0 / math.sqrt(D)
    # PyTorch parameter shapes.
    w_in = init(ks[0], (3 * D, D), w_scale)     # attention.in_proj_weight
    b_in = init(ks[1], (3 * D,), 0.02)          # attention.in_proj_bias
    w_out = init(ks[2], (D, D), w_scale)        # attention.out_proj.weight
    b_out = init(ks[3], (D,), 0.02)             # attention.out_proj.bias
    ln_w = 1.0 + init(ks[4], (D,), 0.02)        # layer_norm.weight
    ln_b = init(ks[5], (D,), 0.02)              # layer_norm.bias
    x = jax.random.normal(ks[6], (B, T, D), jnp.float32)

    # Kernel-friendly packing: one weight slab + one (6, D) row tile.
    w_all = jnp.concatenate([w_in.T, w_out.T], axis=1)          # (D, 4D)
    p_rows = jnp.stack([b_in[:D], b_in[D:2 * D], b_in[2 * D:],
                        b_out, ln_w, ln_b], axis=0)             # (6, D)
    return x, (w_in, b_in, w_out, b_out, ln_w, ln_b), (w_all, p_rows)


if __name__ == "__main__":
    x, torch_params, (w_all, p_rows) = make_params()
    out = jax.block_until_ready(mhsa_forward(x, w_all, p_rows))
    ref = ref_forward(x, *torch_params)
    assert out.shape == (B, T, D)
    max_err = float(jnp.max(jnp.abs(out - ref)))
    assert jnp.allclose(out, ref, atol=2e-2, rtol=2e-2), max_err
    print("KERNEL_OK")
</pallas_src>

<mosaic_0001>
module attributes {stable_mosaic.version = 11 : i64} {
  func.func @mhsa_kernel(%arg0: i32, %arg1: memref<2x16x128xf32, #tpu.memory_space<vmem>>, %arg2: memref<128x512xf32, #tpu.memory_space<vmem>>, %arg3: memref<6x128xf32, #tpu.memory_space<vmem>>, %arg4: memref<2x16x128xf32, #tpu.memory_space<vmem>>) attributes {dimension_semantics = [#tpu.dimension_semantics<arbitrary>], iteration_bounds = array<i64: 1>, scalar_prefetch = 0 : i64, scratch_operands = 0 : i64, tpu.core_type = #tpu.core_type<tc>, window_params = [{pipeline_mode = #tpu.pipeline_mode<synchronous>, transform_indices = @transform_0, window_bounds = array<i64: 2, 16, 128>}, {pipeline_mode = #tpu.pipeline_mode<synchronous>, transform_indices = @transform_1, window_bounds = array<i64: 128, 512>}, {pipeline_mode = #tpu.pipeline_mode<synchronous>, transform_indices = @transform_2, window_bounds = array<i64: 6, 128>}, {pipeline_mode = #tpu.pipeline_mode<synchronous>, transform_indices = @transform_3, window_bounds = array<i64: 2, 16, 128>}]} {
    %c0 = arith.constant 0 : index
    %c0_0 = arith.constant 0 : index
    %c0_1 = arith.constant 0 : index
    %0 = vector.load %arg1[%c0, %c0_0, %c0_1] : memref<2x16x128xf32, #tpu.memory_space<vmem>>, vector<2x16x128xf32>
    %1 = vector.shape_cast %0 : vector<2x16x128xf32> to vector<32x128xf32>
    %c0_2 = arith.constant 0 : index
    %c0_3 = arith.constant 0 : index
    %2 = vector.load %arg2[%c0_2, %c0_3] : memref<128x512xf32, #tpu.memory_space<vmem>>, vector<128x384xf32>
    %c0_4 = arith.constant 0 : index
    %c384 = arith.constant 384 : index
    %3 = vector.load %arg2[%c0_4, %c384] : memref<128x512xf32, #tpu.memory_space<vmem>>, vector<128x128xf32>
    %c0_5 = arith.constant 0 : index
    %c0_6 = arith.constant 0 : index
    %4 = vector.load %arg3[%c0_5, %c0_6] : memref<6x128xf32, #tpu.memory_space<vmem>>, vector<6x128xf32>
    %5 = vector.extract_strided_slice %4 {offsets = [0, 0], sizes = [1, 128], strides = [1, 1]} : vector<6x128xf32> to vector<1x128xf32>
    %6 = vector.extract_strided_slice %4 {offsets = [1, 0], sizes = [1, 128], strides = [1, 1]} : vector<6x128xf32> to vector<1x128xf32>
    %7 = vector.extract_strided_slice %4 {offsets = [2, 0], sizes = [1, 128], strides = [1, 1]} : vector<6x128xf32> to vector<1x128xf32>
    %8 = vector.extract_strided_slice %4 {offsets = [3, 0], sizes = [1, 128], strides = [1, 1]} : vector<6x128xf32> to vector<1x128xf32>
    %9 = vector.extract_strided_slice %4 {offsets = [4, 0], sizes = [1, 128], strides = [1, 1]} : vector<6x128xf32> to vector<1x128xf32>
    %10 = vector.extract_strided_slice %4 {offsets = [5, 0], sizes = [1, 128], strides = [1, 1]} : vector<6x128xf32> to vector<1x128xf32>
    %cst = arith.constant dense<0.000000e+00> : vector<32x384xf32>
    %11 = tpu.matmul %1, %2, %cst {dimension_numbers = #tpu.dot_dimension_numbers<[1], [0], [0], [1], [0, 0, 1, 1], [], []>} : vector<32x128xf32>, vector<128x384xf32>, vector<32x384xf32> -> vector<32x384xf32>
    %12 = vector.extract_strided_slice %11 {offsets = [0, 0], sizes = [32, 128], strides = [1, 1]} : vector<32x384xf32> to vector<32x128xf32>
    %13 = vector.broadcast %5 : vector<1x128xf32> to vector<32x128xf32>
    %14 = arith.addf %12, %13 : vector<32x128xf32>
    %cst_7 = arith.constant 2.500000e-01 : f32
    %15 = vector.broadcast %cst_7 : f32 to vector<32x128xf32>
    %16 = arith.mulf %14, %15 : vector<32x128xf32>
    %17 = vector.shape_cast %16 : vector<32x128xf32> to vector<2x16x128xf32>
    %18 = vector.extract_strided_slice %11 {offsets = [0, 128], sizes = [32, 128], strides = [1, 1]} : vector<32x384xf32> to vector<32x128xf32>
    %19 = vector.broadcast %6 : vector<1x128xf32> to vector<32x128xf32>
    %20 = arith.addf %18, %19 : vector<32x128xf32>
    %21 = vector.shape_cast %20 : vector<32x128xf32> to vector<2x16x128xf32>
    %22 = vector.extract_strided_slice %11 {offsets = [0, 256], sizes = [32, 128], strides = [1, 1]} : vector<32x384xf32> to vector<32x128xf32>
    %23 = vector.broadcast %7 : vector<1x128xf32> to vector<32x128xf32>
    %24 = arith.addf %22, %23 : vector<32x128xf32>
    %25 = vector.shape_cast %24 : vector<32x128xf32> to vector<2x16x128xf32>
    %26 = vector.extract_strided_slice %17 {offsets = [0, 0, 0], sizes = [2, 16, 16], strides = [1, 1, 1]} : vector<2x16x128xf32> to vector<2x16x16xf32>
    %27 = vector.extract_strided_slice %21 {offsets = [0, 0, 0], sizes = [2, 16, 16], strides = [1, 1, 1]} : vector<2x16x128xf32> to vector<2x16x16xf32>
    %28 = vector.extract_strided_slice %25 {offsets = [0, 0, 0], sizes = [2, 16, 16], strides = [1, 1, 1]} : vector<2x16x128xf32> to vector<2x16x16xf32>
    "tpu.trace_start"() <{level = 10 : i32, message = "btd,bsd->bts"}> : () -> ()
    %cst_8 = arith.constant dense<0.000000e+00> : vector<2x16x16xf32>
    %29 = tpu.matmul %26, %27, %cst_8 {dimension_numbers = #tpu.dot_dimension_numbers<[2], [2], [1], [1], [0, 0, 0, 1, 1, 1], [0], [0]>} : vector<2x16x16xf32>, vector<2x16x16xf32>, vector<2x16x16xf32> -> vector<2x16x16xf32>
    "tpu.trace_stop"() : () -> ()
    %cst_9 = arith.constant dense<0xFF800000> : vector<2x16xf32>
    %30 = vector.multi_reduction <maximumf>, %29, %cst_9 [2] : vector<2x16x16xf32> to vector<2x16xf32>
    %31 = vector.shape_cast %30 : vector<2x16xf32> to vector<2x16x1xf32>
    %32 = vector.broadcast %31 : vector<2x16x1xf32> to vector<2x16x16xf32>
    %33 = arith.subf %29, %32 : vector<2x16x16xf32>
    %34 = math.exp %33 : vector<2x16x16xf32>
    %cst_10 = arith.constant dense<0.000000e+00> : vector<2x16xf32>
    %35 = vector.multi_reduction <add>, %34, %cst_10 [2] : vector<2x16x16xf32> to vector<2x16xf32>
    %36 = vector.shape_cast %35 : vector<2x16xf32> to vector<2x16x1xf32>
    %37 = vector.broadcast %36 : vector<2x16x1xf32> to vector<2x16x16xf32>
    %38 = arith.divf %34, %37 : vector<2x16x16xf32>
    "tpu.trace_start"() <{level = 10 : i32, message = "bts,bsd->btd"}> : () -> ()
    %cst_11 = arith.constant dense<0.000000e+00> : vector<2x16x16xf32>
    %39 = tpu.matmul %38, %28, %cst_11 {dimension_numbers = #tpu.dot_dimension_numbers<[2], [1], [1], [2], [0, 0, 0, 1, 1, 2], [0], [0]>} : vector<2x16x16xf32>, vector<2x16x16xf32>, vector<2x16x16xf32> -> vector<2x16x16xf32>
    "tpu.trace_stop"() : () -> ()
    %40 = vector.extract_strided_slice %17 {offsets = [0, 0, 16], sizes = [2, 16, 16], strides = [1, 1, 1]} : vector<2x16x128xf32> to vector<2x16x16xf32>
    %41 = vector.extract_strided_slice %21 {offsets = [0, 0, 16], sizes = [2, 16, 16], strides = [1, 1, 1]} : vector<2x16x128xf32> to vector<2x16x16xf32>
    %42 = vector.extract_strided_slice %25 {offsets = [0, 0, 16], sizes = [2, 16, 16], strides = [1, 1, 1]} : vector<2x16x128xf32> to vector<2x16x16xf32>
    "tpu.trace_start"() <{level = 10 : i32, message = "btd,bsd->bts"}> : () -> ()
    %cst_12 = arith.constant dense<0.000000e+00> : vector<2x16x16xf32>
    %43 = tpu.matmul %40, %41, %cst_12 {dimension_numbers = #tpu.dot_dimension_numbers<[2], [2], [1], [1], [0, 0, 0, 1, 1, 1], [0], [0]>} : vector<2x16x16xf32>, vector<2x16x16xf32>, vector<2x16x16xf32> -> vector<2x16x16xf32>
    "tpu.trace_stop"() : () -> ()
    %cst_13 = arith.constant dense<0xFF800000> : vector<2x16xf32>
    %44 = vector.multi_reduction <maximumf>, %43, %cst_13 [2] : vector<2x16x16xf32> to vector<2x16xf32>
    %45 = vector.shape_cast %44 : vector<2x16xf32> to vector<2x16x1xf32>
    %46 = vector.broadcast %45 : vector<2x16x1xf32> to vector<2x16x16xf32>
    %47 = arith.subf %43, %46 : vector<2x16x16xf32>
    %48 = math.exp %47 : vector<2x16x16xf32>
    %cst_14 = arith.constant dense<0.000000e+00> : vector<2x16xf32>
    %49 = vector.multi_reduction <add>, %48, %cst_14 [2] : vector<2x16x16xf32> to vector<2x16xf32>
    %50 = vector.shape_cast %49 : vector<2x16xf32> to vector<2x16x1xf32>
    %51 = vector.broadcast %50 : vector<2x16x1xf32> to vector<2x16x16xf32>
    %52 = arith.divf %48, %51 : vector<2x16x16xf32>
    "tpu.trace_start"() <{level = 10 : i32, message = "bts,bsd->btd"}> : () -> ()
    %cst_15 = arith.constant dense<0.000000e+00> : vector<2x16x16xf32>
    %53 = tpu.matmul %52, %42, %cst_15 {dimension_numbers = #tpu.dot_dimension_numbers<[2], [1], [1], [2], [0, 0, 0, 1, 1, 2], [0], [0]>} : vector<2x16x16xf32>, vector<2x16x16xf32>, vector<2x16x16xf32> -> vector<2x16x16xf32>
    "tpu.trace_stop"() : () -> ()
    %54 = vector.extract_strided_slice %17 {offsets = [0, 0, 32], sizes = [2, 16, 16], strides = [1, 1, 1]} : vector<2x16x128xf32> to vector<2x16x16xf32>
    %55 = vector.extract_strided_slice %21 {offsets = [0, 0, 32], sizes = [2, 16, 16], strides = [1, 1, 1]} : vector<2x16x128xf32> to vector<2x16x16xf32>
    %56 = vector.extract_strided_slice %25 {offsets = [0, 0, 32], sizes = [2, 16, 16], strides = [1, 1, 1]} : vector<2x16x128xf32> to vector<2x16x16xf32>
    "tpu.trace_start"() <{level = 10 : i32, message = "btd,bsd->bts"}> : () -> ()
    %cst_16 = arith.constant dense<0.000000e+00> : vector<2x16x16xf32>
    %57 = tpu.matmul %54, %55, %cst_16 {dimension_numbers = #tpu.dot_dimension_numbers<[2], [2], [1], [1], [0, 0, 0, 1, 1, 1], [0], [0]>} : vector<2x16x16xf32>, vector<2x16x16xf32>, vector<2x16x16xf32> -> vector<2x16x16xf32>
    "tpu.trace_stop"() : () -> ()
    %cst_17 = arith.constant dense<0xFF800000> : vector<2x16xf32>
    %58 = vector.multi_reduction <maximumf>, %57, %cst_17 [2] : vector<2x16x16xf32> to vector<2x16xf32>
    %59 = vector.shape_cast %58 : vector<2x16xf32> to vector<2x16x1xf32>
    %60 = vector.broadcast %59 : vector<2x16x1xf32> to vector<2x16x16xf32>
    %61 = arith.subf %57, %60 : vector<2x16x16xf32>
    %62 = math.exp %61 : vector<2x16x16xf32>
    %cst_18 = arith.constant dense<0.000000e+00> : vector<2x16xf32>
    %63 = vector.multi_reduction <add>, %62, %cst_18 [2] : vector<2x16x16xf32> to vector<2x16xf32>
    %64 = vector.shape_cast %63 : vector<2x16xf32> to vector<2x16x1xf32>
    %65 = vector.broadcast %64 : vector<2x16x1xf32> to vector<2x16x16xf32>
    %66 = arith.divf %62, %65 : vector<2x16x16xf32>
    "tpu.trace_start"() <{level = 10 : i32, message = "bts,bsd->btd"}> : () -> ()
    %cst_19 = arith.constant dense<0.000000e+00> : vector<2x16x16xf32>
    %67 = tpu.matmul %66, %56, %cst_19 {dimension_numbers = #tpu.dot_dimension_numbers<[2], [1], [1], [2], [0, 0, 0, 1, 1, 2], [0], [0]>} : vector<2x16x16xf32>, vector<2x16x16xf32>, vector<2x16x16xf32> -> vector<2x16x16xf32>
    "tpu.trace_stop"() : () -> ()
    %68 = vector.extract_strided_slice %17 {offsets = [0, 0, 48], sizes = [2, 16, 16], strides = [1, 1, 1]} : vector<2x16x128xf32> to vector<2x16x16xf32>
    %69 = vector.extract_strided_slice %21 {offsets = [0, 0, 48], sizes = [2, 16, 16], strides = [1, 1, 1]} : vector<2x16x128xf32> to vector<2x16x16xf32>
    %70 = vector.extract_strided_slice %25 {offsets = [0, 0, 48], sizes = [2, 16, 16], strides = [1, 1, 1]} : vector<2x16x128xf32> to vector<2x16x16xf32>
    "tpu.trace_start"() <{level = 10 : i32, message = "btd,bsd->bts"}> : () -> ()
    %cst_20 = arith.constant dense<0.000000e+00> : vector<2x16x16xf32>
    %71 = tpu.matmul %68, %69, %cst_20 {dimension_numbers = #tpu.dot_dimension_numbers<[2], [2], [1], [1], [0, 0, 0, 1, 1, 1], [0], [0]>} : vector<2x16x16xf32>, vector<2x16x16xf32>, vector<2x16x16xf32> -> vector<2x16x16xf32>
    "tpu.trace_stop"() : () -> ()
    %cst_21 = arith.constant dense<0xFF800000> : vector<2x16xf32>
    %72 = vector.multi_reduction <maximumf>, %71, %cst_21 [2] : vector<2x16x16xf32> to vector<2x16xf32>
    %73 = vector.shape_cast %72 : vector<2x16xf32> to vector<2x16x1xf32>
    %74 = vector.broadcast %73 : vector<2x16x1xf32> to vector<2x16x16xf32>
    %75 = arith.subf %71, %74 : vector<2x16x16xf32>
    %76 = math.exp %75 : vector<2x16x16xf32>
    %cst_22 = arith.constant dense<0.000000e+00> : vector<2x16xf32>
    %77 = vector.multi_reduction <add>, %76, %cst_22 [2] : vector<2x16x16xf32> to vector<2x16xf32>
    %78 = vector.shape_cast %77 : vector<2x16xf32> to vector<2x16x1xf32>
    %79 = vector.broadcast %78 : vector<2x16x1xf32> to vector<2x16x16xf32>
    %80 = arith.divf %76, %79 : vector<2x16x16xf32>
    "tpu.trace_start"() <{level = 10 : i32, message = "bts,bsd->btd"}> : () -> ()
    %cst_23 = arith.constant dense<0.000000e+00> : vector<2x16x16xf32>
    %81 = tpu.matmul %80, %70, %cst_23 {dimension_numbers = #tpu.dot_dimension_numbers<[2], [1], [1], [2], [0, 0, 0, 1, 1, 2], [0], [0]>} : vector<2x16x16xf32>, vector<2x16x16xf32>, vector<2x16x16xf32> -> vector<2x16x16xf32>
    "tpu.trace_stop"() : () -> ()
    %82 = vector.extract_strided_slice %17 {offsets = [0, 0, 64], sizes = [2, 16, 16], strides = [1, 1, 1]} : vector<2x16x128xf32> to vector<2x16x16xf32>
    %83 = vector.extract_strided_slice %21 {offsets = [0, 0, 64], sizes = [2, 16, 16], strides = [1, 1, 1]} : vector<2x16x128xf32> to vector<2x16x16xf32>
    %84 = vector.extract_strided_slice %25 {offsets = [0, 0, 64], sizes = [2, 16, 16], strides = [1, 1, 1]} : vector<2x16x128xf32> to vector<2x16x16xf32>
    "tpu.trace_start"() <{level = 10 : i32, message = "btd,bsd->bts"}> : () -> ()
    %cst_24 = arith.constant dense<0.000000e+00> : vector<2x16x16xf32>
    %85 = tpu.matmul %82, %83, %cst_24 {dimension_numbers = #tpu.dot_dimension_numbers<[2], [2], [1], [1], [0, 0, 0, 1, 1, 1], [0], [0]>} : vector<2x16x16xf32>, vector<2x16x16xf32>, vector<2x16x16xf32> -> vector<2x16x16xf32>
    "tpu.trace_stop"() : () -> ()
    %cst_25 = arith.constant dense<0xFF800000> : vector<2x16xf32>
    %86 = vector.multi_reduction <maximumf>, %85, %cst_25 [2] : vector<2x16x16xf32> to vector<2x16xf32>
    %87 = vector.shape_cast %86 : vector<2x16xf32> to vector<2x16x1xf32>
    %88 = vector.broadcast %87 : vector<2x16x1xf32> to vector<2x16x16xf32>
    %89 = arith.subf %85, %88 : vector<2x16x16xf32>
    %90 = math.exp %89 : vector<2x16x16xf32>
    %cst_26 = arith.constant dense<0.000000e+00> : vector<2x16xf32>
    %91 = vector.multi_reduction <add>, %90, %cst_26 [2] : vector<2x16x16xf32> to vector<2x16xf32>
    %92 = vector.shape_cast %91 : vector<2x16xf32> to vector<2x16x1xf32>
    %93 = vector.broadcast %92 : vector<2x16x1xf32> to vector<2x16x16xf32>
    %94 = arith.divf %90, %93 : vector<2x16x16xf32>
    "tpu.trace_start"() <{level = 10 : i32, message = "bts,bsd->btd"}> : () -> ()
    %cst_27 = arith.constant dense<0.000000e+00> : vector<2x16x16xf32>
    %95 = tpu.matmul %94, %84, %cst_27 {dimension_numbers = #tpu.dot_dimension_numbers<[2], [1], [1], [2], [0, 0, 0, 1, 1, 2], [0], [0]>} : vector<2x16x16xf32>, vector<2x16x16xf32>, vector<2x16x16xf32> -> vector<2x16x16xf32>
    "tpu.trace_stop"() : () -> ()
    %96 = vector.extract_strided_slice %17 {offsets = [0, 0, 80], sizes = [2, 16, 16], strides = [1, 1, 1]} : vector<2x16x128xf32> to vector<2x16x16xf32>
    %97 = vector.extract_strided_slice %21 {offsets = [0, 0, 80], sizes = [2, 16, 16], strides = [1, 1, 1]} : vector<2x16x128xf32> to vector<2x16x16xf32>
    %98 = vector.extract_strided_slice %25 {offsets = [0, 0, 80], sizes = [2, 16, 16], strides = [1, 1, 1]} : vector<2x16x128xf32> to vector<2x16x16xf32>
    "tpu.trace_start"() <{level = 10 : i32, message = "btd,bsd->bts"}> : () -> ()
    %cst_28 = arith.constant dense<0.000000e+00> : vector<2x16x16xf32>
    %99 = tpu.matmul %96, %97, %cst_28 {dimension_numbers = #tpu.dot_dimension_numbers<[2], [2], [1], [1], [0, 0, 0, 1, 1, 1], [0], [0]>} : vector<2x16x16xf32>, vector<2x16x16xf32>, vector<2x16x16xf32> -> vector<2x16x16xf32>
    "tpu.trace_stop"() : () -> ()
    %cst_29 = arith.constant dense<0xFF800000> : vector<2x16xf32>
    %100 = vector.multi_reduction <maximumf>, %99, %cst_29 [2] : vector<2x16x16xf32> to vector<2x16xf32>
    %101 = vector.shape_cast %100 : vector<2x16xf32> to vector<2x16x1xf32>
    %102 = vector.broadcast %101 : vector<2x16x1xf32> to vector<2x16x16xf32>
    %103 = arith.subf %99, %102 : vector<2x16x16xf32>
    %104 = math.exp %103 : vector<2x16x16xf32>
    %cst_30 = arith.constant dense<0.000000e+00> : vector<2x16xf32>
    %105 = vector.multi_reduction <add>, %104, %cst_30 [2] : vector<2x16x16xf32> to vector<2x16xf32>
    %106 = vector.shape_cast %105 : vector<2x16xf32> to vector<2x16x1xf32>
    %107 = vector.broadcast %106 : vector<2x16x1xf32> to vector<2x16x16xf32>
    %108 = arith.divf %104, %107 : vector<2x16x16xf32>
    "tpu.trace_start"() <{level = 10 : i32, message = "bts,bsd->btd"}> : () -> ()
    %cst_31 = arith.constant dense<0.000000e+00> : vector<2x16x16xf32>
    %109 = tpu.matmul %108, %98, %cst_31 {dimension_numbers = #tpu.dot_dimension_numbers<[2], [1], [1], [2], [0, 0, 0, 1, 1, 2], [0], [0]>} : vector<2x16x16xf32>, vector<2x16x16xf32>, vector<2x16x16xf32> -> vector<2x16x16xf32>
    "tpu.trace_stop"() : () -> ()
    %110 = vector.extract_strided_slice %17 {offsets = [0, 0, 96], sizes = [2, 16, 16], strides = [1, 1, 1]} : vector<2x16x128xf32> to vector<2x16x16xf32>
    %111 = vector.extract_strided_slice %21 {offsets = [0, 0, 96], sizes = [2, 16, 16], strides = [1, 1, 1]} : vector<2x16x128xf32> to vector<2x16x16xf32>
    %112 = vector.extract_strided_slice %25 {offsets = [0, 0, 96], sizes = [2, 16, 16], strides = [1, 1, 1]} : vector<2x16x128xf32> to vector<2x16x16xf32>
    "tpu.trace_start"() <{level = 10 : i32, message = "btd,bsd->bts"}> : () -> ()
    %cst_32 = arith.constant dense<0.000000e+00> : vector<2x16x16xf32>
    %113 = tpu.matmul %110, %111, %cst_32 {dimension_numbers = #tpu.dot_dimension_numbers<[2], [2], [1], [1], [0, 0, 0, 1, 1, 1], [0], [0]>} : vector<2x16x16xf32>, vector<2x16x16xf32>, vector<2x16x16xf32> -> vector<2x16x16xf32>
    "tpu.trace_stop"() : () -> ()
    %cst_33 = arith.constant dense<0xFF800000> : vector<2x16xf32>
    %114 = vector.multi_reduction <maximumf>, %113, %cst_33 [2] : vector<2x16x16xf32> to vector<2x16xf32>
    %115 = vector.shape_cast %114 : vector<2x16xf32> to vector<2x16x1xf32>
    %116 = vector.broadcast %115 : vector<2x16x1xf32> to vector<2x16x16xf32>
    %117 = arith.subf %113, %116 : vector<2x16x16xf32>
    %118 = math.exp %117 : vector<2x16x16xf32>
    %cst_34 = arith.constant dense<0.000000e+00> : vector<2x16xf32>
    %119 = vector.multi_reduction <add>, %118, %cst_34 [2] : vector<2x16x16xf32> to vector<2x16xf32>
    %120 = vector.shape_cast %119 : vector<2x16xf32> to vector<2x16x1xf32>
    %121 = vector.broadcast %120 : vector<2x16x1xf32> to vector<2x16x16xf32>
    %122 = arith.divf %118, %121 : vector<2x16x16xf32>
    "tpu.trace_start"() <{level = 10 : i32, message = "bts,bsd->btd"}> : () -> ()
    %cst_35 = arith.constant dense<0.000000e+00> : vector<2x16x16xf32>
    %123 = tpu.matmul %122, %112, %cst_35 {dimension_numbers = #tpu.dot_dimension_numbers<[2], [1], [1], [2], [0, 0, 0, 1, 1, 2], [0], [0]>} : vector<2x16x16xf32>, vector<2x16x16xf32>, vector<2x16x16xf32> -> vector<2x16x16xf32>
    "tpu.trace_stop"() : () -> ()
    %124 = vector.extract_strided_slice %17 {offsets = [0, 0, 112], sizes = [2, 16, 16], strides = [1, 1, 1]} : vector<2x16x128xf32> to vector<2x16x16xf32>
    %125 = vector.extract_strided_slice %21 {offsets = [0, 0, 112], sizes = [2, 16, 16], strides = [1, 1, 1]} : vector<2x16x128xf32> to vector<2x16x16xf32>
    %126 = vector.extract_strided_slice %25 {offsets = [0, 0, 112], sizes = [2, 16, 16], strides = [1, 1, 1]} : vector<2x16x128xf32> to vector<2x16x16xf32>
    "tpu.trace_start"() <{level = 10 : i32, message = "btd,bsd->bts"}> : () -> ()
    %cst_36 = arith.constant dense<0.000000e+00> : vector<2x16x16xf32>
    %127 = tpu.matmul %124, %125, %cst_36 {dimension_numbers = #tpu.dot_dimension_numbers<[2], [2], [1], [1], [0, 0, 0, 1, 1, 1], [0], [0]>} : vector<2x16x16xf32>, vector<2x16x16xf32>, vector<2x16x16xf32> -> vector<2x16x16xf32>
    "tpu.trace_stop"() : () -> ()
    %cst_37 = arith.constant dense<0xFF800000> : vector<2x16xf32>
    %128 = vector.multi_reduction <maximumf>, %127, %cst_37 [2] : vector<2x16x16xf32> to vector<2x16xf32>
    %129 = vector.shape_cast %128 : vector<2x16xf32> to vector<2x16x1xf32>
    %130 = vector.broadcast %129 : vector<2x16x1xf32> to vector<2x16x16xf32>
    %131 = arith.subf %127, %130 : vector<2x16x16xf32>
    %132 = math.exp %131 : vector<2x16x16xf32>
    %cst_38 = arith.constant dense<0.000000e+00> : vector<2x16xf32>
    %133 = vector.multi_reduction <add>, %132, %cst_38 [2] : vector<2x16x16xf32> to vector<2x16xf32>
    %134 = vector.shape_cast %133 : vector<2x16xf32> to vector<2x16x1xf32>
    %135 = vector.broadcast %134 : vector<2x16x1xf32> to vector<2x16x16xf32>
    %136 = arith.divf %132, %135 : vector<2x16x16xf32>
    "tpu.trace_start"() <{level = 10 : i32, message = "bts,bsd->btd"}> : () -> ()
    %cst_39 = arith.constant dense<0.000000e+00> : vector<2x16x16xf32>
    %137 = tpu.matmul %136, %126, %cst_39 {dimension_numbers = #tpu.dot_dimension_numbers<[2], [1], [1], [2], [0, 0, 0, 1, 1, 2], [0], [0]>} : vector<2x16x16xf32>, vector<2x16x16xf32>, vector<2x16x16xf32> -> vector<2x16x16xf32>
    "tpu.trace_stop"() : () -> ()
    %138 = tpu.concatenate %39, %53, %67, %81, %95, %109, %123, %137 in 2 : vector<2x16x16xf32>, vector<2x16x16xf32>, vector<2x16x16xf32>, vector<2x16x16xf32>, vector<2x16x16xf32>, vector<2x16x16xf32>, vector<2x16x16xf32>, vector<2x16x16xf32> -> vector<2x16x128xf32>
    %139 = vector.shape_cast %138 : vector<2x16x128xf32> to vector<32x128xf32>
    %cst_40 = arith.constant dense<0.000000e+00> : vector<32x128xf32>
    %140 = tpu.matmul %139, %3, %cst_40 {dimension_numbers = #tpu.dot_dimension_numbers<[1], [0], [0], [1], [0, 0, 1, 1], [], []>} : vector<32x128xf32>, vector<128x128xf32>, vector<32x128xf32> -> vector<32x128xf32>
    %141 = vector.broadcast %8 : vector<1x128xf32> to vector<32x128xf32>
    %142 = arith.addf %140, %141 : vector<32x128xf32>
    %143 = arith.addf %142, %1 : vector<32x128xf32>
    %cst_41 = arith.constant dense<0.000000e+00> : vector<32xf32>
    %144 = vector.multi_reduction <add>, %143, %cst_41 [1] : vector<32x128xf32> to vector<32xf32>
    %145 = vector.shape_cast %144 : vector<32xf32> to vector<32x1xf32>
    %cst_42 = arith.constant 1.280000e+02 : f32
    %146 = vector.broadcast %cst_42 : f32 to vector<32x1xf32>
    %147 = arith.divf %145, %146 : vector<32x1xf32>
    %148 = vector.broadcast %147 : vector<32x1xf32> to vector<32x128xf32>
    %149 = arith.subf %143, %148 : vector<32x128xf32>
    %150 = vector.broadcast %147 : vector<32x1xf32> to vector<32x128xf32>
    %151 = arith.subf %143, %150 : vector<32x128xf32>
    %152 = arith.mulf %149, %151 : vector<32x128xf32>
    %cst_43 = arith.constant dense<0.000000e+00> : vector<32xf32>
    %153 = vector.multi_reduction <add>, %152, %cst_43 [1] : vector<32x128xf32> to vector<32xf32>
    %154 = vector.shape_cast %153 : vector<32xf32> to vector<32x1xf32>
    %cst_44 = arith.constant 1.280000e+02 : f32
    %155 = vector.broadcast %cst_44 : f32 to vector<32x1xf32>
    %156 = arith.divf %154, %155 : vector<32x1xf32>
    %157 = vector.broadcast %147 : vector<32x1xf32> to vector<32x128xf32>
    %158 = arith.subf %143, %157 : vector<32x128xf32>
    %cst_45 = arith.constant 9.99999974E-6 : f32
    %159 = vector.broadcast %cst_45 : f32 to vector<32x1xf32>
    %160 = arith.addf %156, %159 : vector<32x1xf32>
    %161 = math.rsqrt %160 : vector<32x1xf32>
    %162 = vector.broadcast %161 : vector<32x1xf32> to vector<32x128xf32>
    %163 = arith.mulf %158, %162 : vector<32x128xf32>
    %164 = vector.broadcast %9 : vector<1x128xf32> to vector<32x128xf32>
    %165 = arith.mulf %163, %164 : vector<32x128xf32>
    %166 = vector.broadcast %10 : vector<1x128xf32> to vector<32x128xf32>
    %167 = arith.addf %165, %166 : vector<32x128xf32>
    %168 = vector.shape_cast %167 : vector<32x128xf32> to vector<2x16x128xf32>
    %c0_46 = arith.constant 0 : index
    %c0_47 = arith.constant 0 : index
    %c0_48 = arith.constant 0 : index
    %169 = vector.load %arg4[%c0_46, %c0_47, %c0_48] : memref<2x16x128xf32, #tpu.memory_space<vmem>>, vector<2x16x128xf32>
    tpu.vector_store %arg4[%c0_46, %c0_47, %c0_48], %168 {strides = array<i32>} : memref<2x16x128xf32, #tpu.memory_space<vmem>>, vector<2x16x128xf32>,
    return
  }
  func.func @transform_0(%arg0: i32) -> (i32, i32, i32) {
    %c0_i32 = arith.constant 0 : i32
    %c0_i32_0 = arith.constant 0 : i32
    %c0_i32_1 = arith.constant 0 : i32
    %c0_i32_2 = arith.constant 0 : i32
    return %c0_i32, %c0_i32_0, %c0_i32_1 : i32, i32, i32
  }
  func.func @transform_1(%arg0: i32) -> (i32, i32) {
    %c0_i32 = arith.constant 0 : i32
    %c0_i32_0 = arith.constant 0 : i32
    %c0_i32_1 = arith.constant 0 : i32
    return %c0_i32, %c0_i32_0 : i32, i32
  }
  func.func @transform_2(%arg0: i32) -> (i32, i32) {
    %c0_i32 = arith.constant 0 : i32
    %c0_i32_0 = arith.constant 0 : i32
    %c0_i32_1 = arith.constant 0 : i32
    return %c0_i32, %c0_i32_0 : i32, i32
  }
  func.func @transform_3(%arg0: i32) -> (i32, i32, i32) {
    %c0_i32 = arith.constant 0 : i32
    %c0_i32_0 = arith.constant 0 : i32
    %c0_i32_1 = arith.constant 0 : i32
    %c0_i32_2 = arith.constant 0 : i32
    return %c0_i32, %c0_i32_0, %c0_i32_1 : i32, i32, i32
  }
}

</mosaic_0001>

<bundles_post_ra>
// kernel: tpu_custom_call.1
= control target key start
LH: loop header
LB: loop body
LE: loop exit
PB: predicated region body
PF: predicated region fallthrough
CT: control target
= control target key end

     0   :  { %8 = vsyncpa [#allocation3], 0  ;;  %s5725_s0 = inlined_call_operand.hbm [shape: f32[2,16,128], index: 0, kind: input, shape index: {}]   ;;  %s5726_s1 = inlined_call_operand.hbm [shape: f32[128,512], index: 1, kind: input, shape index: {}]   ;;  %s5727_s2 = inlined_call_operand.hbm [shape: f32[6,128], index: 2, kind: input, shape index: {}]   ;;  %s5728_s3 = inlined_call_operand.hbm [shape: f32[2,16,128], index: 3, kind: output, shape index: {}]  }
   0x1   :  { %9 = vsyncpa [#allocation6], 0 }
   0x2   :  { %10 = vsyncpa [#allocation4], 0  ;;  %s5112_s12 = smov [#allocation5]   ;;  %s5018_s16 = scalar_lea.hbm %s5726_s1, 8192 }
   0x3   :  { %s28_s13 = sshll.u32 %s5112_s12, 4  ;;  %p5019_p0 = scmp.ne.s32.totalorder %s5726_s1, %s5018_s16  ;;  %s29_s13 = int_to_ptr.vmem [resolvable:$true] %s28_s13 }
   0x4   :  { %p5022_p1 = scmp.lt.u32.totalorder %s5018_s16, %s5726_s1 }
   0x6   :  { %p5024_p2 = pnand %p5022_p1, %p5019_p0 }
   0x8   :  { %5027 = shalt.err (!%p5024_p2)
}
   0x9   :  { %s5028_s21 = scalar_lea.vmem %s29_s13, 8192  ;;  %p5033_p4 = scmp.lt.s32.totalorder %s29_s13, %s29_s13 }
   0xa   :  { %p5029_p3 = scmp.ne.s32.totalorder %s29_s13, %s5028_s21  ;;  %p5034_p5 = scmp.lt.s32.totalorder %s5028_s21, %s5028_s21 }
   0xc   :  { %p5035_p6 = por %p5034_p5, %p5033_p4 }
   0xe   :  { %p5036_p7 = pnand %p5035_p6, %p5029_p3 }
  0x10   :  { %5039 = shalt.err (!%p5036_p7)
}
  0x11   :  { %s5113_s22 = smov 512   ;;  %s5114_s23 = smov 32  }
  0x12   :  { %34 = dma.hbm_to_vmem [thread:$0]  %s5726_s1, 8192, %s29_s13, [#allocation6], %s5113_s22, %s5113_s22, %s5114_s23  }
  0x13   :  { %s5115_s26 = smov [#allocation2]   ;;  %s5040_s30 = scalar_lea.hbm %s5725_s0, 512 }
  0x14   :  { %s16_s27 = sshll.u32 %s5115_s26, 4  ;;  %p5041_p8 = scmp.ne.s32.totalorder %s5725_s0, %s5040_s30  ;;  %s17_s27 = int_to_ptr.vmem [resolvable:$true] %s16_s27 }
  0x15   :  { %p5044_p9 = scmp.lt.u32.totalorder %s5040_s30, %s5725_s0 }
  0x17   :  { %p5046_p10 = pnand %p5044_p9, %p5041_p8 }
  0x19   :  { %5049 = shalt.err (!%p5046_p10)
}
  0x1a   :  { %s5050_s8 = scalar_lea.vmem %s17_s27, 512  ;;  %p5055_p12 = scmp.lt.s32.totalorder %s17_s27, %s17_s27 }
  0x1b   :  { %p5051_p11 = scmp.ne.s32.totalorder %s17_s27, %s5050_s8  ;;  %p5056_p13 = scmp.lt.s32.totalorder %s5050_s8, %s5050_s8 }
  0x1d   :  { %p5057_p0 = por %p5056_p13, %p5055_p12 }
  0x1f   :  { %p5058_p1 = pnand %p5057_p0, %p5051_p11 }
  0x21   :  { %5061 = shalt.err (!%p5058_p1)
}
  0x22   :  { %s5116_s1 = smov 128   ;;  %s5117_s9 = smov 8  }
  0x23   :  { %22 = dma.hbm_to_vmem [thread:$0]  %s5725_s0, 512, %s17_s27, [#allocation3], %s5116_s1, %s5116_s1, %s5117_s9  }
  0x24   :  { %s5118_s12 = smov [#allocation7]   ;;  %s5062_s16 = scalar_lea.hbm %s5727_s2, 128 }
  0x25   :  { %s41_s13 = sshll.u32 %s5118_s12, 4  ;;  %p5063_p2 = scmp.ne.s32.totalorder %s5727_s2, %s5062_s16  ;;  %s42_s13 = int_to_ptr.vmem [resolvable:$true] %s41_s13 }
  0x26   :  { %p5066_p3 = scmp.lt.u32.totalorder %s5062_s16, %s5727_s2 }
  0x28   :  { %p5068_p4 = pnand %p5066_p3, %p5063_p2 }
  0x2a   :  { %5071 = shalt.err (!%p5068_p4)
}
  0x2b   :  { %s5072_s21 = scalar_lea.vmem %s42_s13, 128  ;;  %p5077_p6 = scmp.lt.s32.totalorder %s42_s13, %s42_s13 }
  0x2c   :  { %p5073_p5 = scmp.ne.s32.totalorder %s42_s13, %s5072_s21  ;;  %p5078_p7 = scmp.lt.s32.totalorder %s5072_s21, %s5072_s21 }
  0x2e   :  { %p5079_p8 = por %p5078_p7, %p5077_p6 }
  0x30   :  { %p5080_p9 = pnand %p5079_p8, %p5073_p5 }
  0x32   :  { %5083 = shalt.err (!%p5080_p9)
}
  0x33   :  { %44 = dma.hbm_to_vmem [thread:$0]  %s5727_s2, 128, %s42_s13, [#allocation6]  }
  0x34   :  { %5106 = dma.done.wait [#allocation3], 512  }
  0x35   :  { %5107 = vsyncadd [#allocation3], 4294966784 }
  0x36   :  { %5108 = dma.done.wait [#allocation6], 8320  }
  0x37   :  { %5109 = vsyncadd [#allocation6], 4294958976  ;;  %v5119_v0 = vmov 0.0   ;;  %v59_v1 = vld [vmem:[#allocation5 + $0x8] sm:$0xff]  ;;  %v58_v3 = vld [vmem:[#allocation5] sm:$0xff]  ;;  %vm325_vm0 = vcmask 130048  }
  0x38   :  { %187 = vmatprep.mubr.f32.mxu0 %v5119_v0  ;;  %v62_v2 = vld [vmem:[#allocation5 + $0x28] sm:$0xff]  ;;  %v61_v5 = vld [vmem:[#allocation5 + $0x20] sm:$0xff]  ;;  %v60_v29 = vld [vmem:[#allocation5 + $0x10] sm:$0xff]  ;;  %s5120_s2 = smov 112   ;;  %s5121_s24 = smov 96   ;;  %vm3626_vm2 = vcmask 261120  }
  0x39   :  { %v4396_v4 = vpack.c.bf16 %v62_v2, %v59_v1  ;;  %v65_v6 = vld [vmem:[#allocation5 + $0x48] sm:$0xff]  ;;  %v4398_v8 = vpack.c.bf16 %v61_v5, %v58_v3  ;;  %v64_v10 = vld [vmem:[#allocation5 + $0x40] sm:$0xff]  ;;  %v63_v30 = vld [vmem:[#allocation5 + $0x30] sm:$0xff]  ;;  %s5122_s25 = smov 80   ;;  %s5123_s26 = smov 64   ;;  %vm3631_vm3 = vcmask 392192  }
  0x3a   :  { %v68_v7 = vld [vmem:[#allocation5 + $0x68] sm:$0xff]  ;;  %v67_v11 = vld [vmem:[#allocation5 + $0x60] sm:$0xff]  ;;  %v66_v31 = vld [vmem:[#allocation5 + $0x50] sm:$0xff]  ;;  %v4428_v35 = vpack.c.bf16 %v63_v30, %v60_v29  ;;  %s5124_s27 = smov 48   ;;  %s5125_s28 = smov 16   ;;  %vm3636_vm4 = vcmask 523264  }
  0x3b   :  { %v4400_v9 = vpack.c.bf16 %v68_v7, %v65_v6  ;;  %v71_v12 = vld [vmem:[#allocation5 + $0x88] sm:$0xff]  ;;  %4397 = vmatprep.subr.bf16.mxu0 %v4396_v4  ;;  %v4402_v14 = vpack.c.bf16 %v67_v11, %v64_v10  ;;  %v70_v16 = vld [vmem:[#allocation5 + $0x80] sm:$0xff]  ;;  %v69_v36 = vld [vmem:[#allocation5 + $0x70] sm:$0xff]  ;;  %vm3641_vm5 = vcmask 654336   ;;  %vm3646_vm6 = vcmask 785408  }
  0x3c   :  { %v74_v13 = vld [vmem:[#allocation5 + $0xa8] sm:$0xff]  ;;  %4399 = vmatpush1.bf16.msra.mxu0 %v4398_v8  ;;  %v73_v17 = vld [vmem:[#allocation5 + $0xa0] sm:$0xff]  ;;  %v4432_v38 = vpack.c.bf16 %v69_v36, %v66_v31  ;;  %v72_v39 = vld [vmem:[#allocation5 + $0x90] sm:$0xff]  ;;  %4429 = vmatprep.subr.bf16.mxu1 %v4428_v35  ;;  %vm3651_vm7 = vcmask 916480  }
  0x3d   :  { %4401 = vmatprep.subr.bf16.mxu0 %v4400_v9  ;;  %v4404_v15 = vpack.c.bf16 %v74_v13, %v71_v12  ;;  %v77_v18 = vld [vmem:[#allocation5 + $0xc8] sm:$0xff]  ;;  %v4406_v20 = vpack.c.bf16 %v73_v17, %v70_v16  ;;  %v76_v22 = vld [vmem:[#allocation5 + $0xc0] sm:$0xff]  ;;  %v75_v40 = vld [vmem:[#allocation5 + $0xb0] sm:$0xff]  ;;  %4431 = vmatpush3.bf16.msra.mxu1 %v4428_v35 }
  0x3e   :  { %v80_v19 = vld [vmem:[#allocation5 + $0xe8] sm:$0xff]  ;;  %v79_v23 = vld [vmem:[#allocation5 + $0xe0] sm:$0xff]  ;;  %4433 = vmatprep.subr.bf16.mxu1 %v4432_v38  ;;  %v4436_v46 = vpack.c.bf16 %v75_v40, %v72_v39  ;;  %v78_v48 = vld [vmem:[#allocation5 + $0xd0] sm:$0xff] }
  0x3f   :  { %v4408_v21 = vpack.c.bf16 %v80_v19, %v77_v18  ;;  %v83_v24 = vld [vmem:[#allocation5 + $0x108] sm:$0xff]  ;;  %v5188_v26 = vld [vmem:[#allocation2] sm:$0xff]  ;;  %v4410_v28 = vpack.c.bf16 %v79_v23, %v76_v22  ;;  %v81_v49 = vld [vmem:[#allocation5 + $0xf0] sm:$0xff] }
  0x40   :  { %4403 = vmatpush1.bf16.msra.mxu0 %v4402_v14  ;;  %v86_v25 = vld [vmem:[#allocation5 + $0x128] sm:$0xff]  ;;  %v82_v27 = vld [vmem:[#allocation5 + $0x100] sm:$0xff]  ;;  %4128 = vmatprep.mubr.f32.mxu1 %v5188_v26  ;;  %v4440_v55 = vpack.c.bf16 %v81_v49, %v78_v48  ;;  %v84_v57 = vld [vmem:[#allocation5 + $0x110] sm:$0xff]  ;;  %v297_v14 = vlaneseq }
  0x41   :  { %4405 = vmatprep.subr.bf16.mxu0 %v4404_v15  ;;  %v4412_v32 = vpack.c.bf16 %v86_v25, %v83_v24  ;;  %v85_v33 = vld [vmem:[#allocation5 + $0x120] sm:$0xff]  ;;  %v89_v34 = vld [vmem:[#allocation5 + $0x148] sm:$0xff]  ;;  %4435 = vmatpush3.bf16.msra.mxu1 %v4432_v38  ;;  %v87_v58 = vld [vmem:[#allocation5 + $0x130] sm:$0xff] }
  0x42   :  { %v92_v37 = vld [vmem:[#allocation5 + $0x168] sm:$0xff]  ;;  %v4414_v41 = vpack.c.bf16 %v85_v33, %v82_v27  ;;  %v88_v43 = vld [vmem:[#allocation5 + $0x140] sm:$0xff]  ;;  %4437 = vmatprep.subr.bf16.mxu1 %v4436_v46  ;;  %v4444_v63 = vpack.c.bf16 %v87_v58, %v84_v57  ;;  %v90_v1 = vld [vmem:[#allocation5 + $0x150] sm:$0xff]  ;;  %v5195_v15 = vshrl.u32 %v297_v14, 7 }
  0x43   :  { %v4416_v42 = vpack.c.bf16 %v92_v37, %v89_v34  ;;  %v91_v44 = vld [vmem:[#allocation5 + $0x160] sm:$0xff]  ;;  %v95_v45 = vld [vmem:[#allocation5 + $0x188] sm:$0xff]  ;;  %v93_v2 = vld [vmem:[#allocation5 + $0x170] sm:$0xff] }
  0x44   :  { %4407 = vmatpush1.bf16.msra.mxu0 %v4406_v20  ;;  %v98_v47 = vld [vmem:[#allocation5 + $0x1a8] sm:$0xff]  ;;  %v4418_v50 = vpack.c.bf16 %v91_v44, %v88_v43  ;;  %v94_v52 = vld [vmem:[#allocation5 + $0x180] sm:$0xff]  ;;  %v4448_v4 = vpack.c.bf16 %v93_v2, %v90_v1  ;;  %v96_v5 = vld [vmem:[#allocation5 + $0x190] sm:$0xff]  ;;  %v299_v16 = vsub.s32 0, %v5195_v15  ;;  %v311_v19 = vsub.s32 1, %v5195_v15 }
  0x45   :  { %4409 = vmatprep.subr.bf16.mxu0 %v4408_v21  ;;  %v4420_v51 = vpack.c.bf16 %v98_v47, %v95_v45  ;;  %v97_v53 = vld [vmem:[#allocation5 + $0x1a0] sm:$0xff]  ;;  %v101_v54 = vld [vmem:[#allocation5 + $0x1c8] sm:$0xff]  ;;  %4439 = vmatpush3.bf16.msra.mxu1 %v4436_v46  ;;  %v99_v6 = vld [vmem:[#allocation5 + $0x1b0] sm:$0xff] }
  0x46   :  { %v104_v56 = vld [vmem:[#allocation5 + $0x1e8] sm:$0xff]  ;;  %v4422_v59 = vpack.c.bf16 %v97_v53, %v94_v52  ;;  %v100_v61 = vld [vmem:[#allocation5 + $0x1c0] sm:$0xff]  ;;  %4441 = vmatprep.subr.bf16.mxu1 %v4440_v55  ;;  %v4452_v7 = vpack.c.bf16 %v99_v6, %v96_v5  ;;  %v102_v8 = vld [vmem:[#allocation5 + $0x1d0] sm:$0xff] }
  0x47   :  { %v4424_v60 = vpack.c.bf16 %v104_v56, %v101_v54  ;;  %v103_v62 = vld [vmem:[#allocation5 + $0x1e0] sm:$0xff]  ;;  %v105_v9 = vld [vmem:[#allocation5 + $0x1f0] sm:$0xff]  ;;  %v55_v10 = vld [vmem:[#allocation2 + $0x8] sm:$0xff] }
  0x48   :  { %4411 = vmatpush1.bf16.msra.mxu0 %v4410_v28  ;;  %v4426_v3 = vpack.c.bf16 %v103_v62, %v100_v61  ;;  %v4456_v11 = vpack.c.bf16 %v105_v9, %v102_v8  ;;  %v56_v12 = vld [vmem:[#allocation2 + $0x10] sm:$0xff]  ;;  %v57_v13 = vld [vmem:[#allocation2 + $0x18] sm:$0xff]  ;;  %v122_v17 = vld [vmem:[#allocation7] sm:$0x3f] }
  0x49   :  { %4413 = vmatprep.subr.bf16.mxu0 %v4412_v32  ;;  %4443 = vmatpush3.bf16.msra.mxu1 %v4440_v55  ;;  %v300_v18 = vrot.slane %v122_v17, %v299_v16  ;;  %v312_v23 = vrot.slane %v122_v17, %v311_v19  ;;  %vm5206_vm1 = vmpackc.low %vm325_vm0, %vm325_vm0 }
  0x4a   :  { %4445 = vmatprep.subr.bf16.mxu1 %v4444_v63 }
  0x4c   :  { %4415 = vmatpush1.bf16.msra.mxu0 %v4414_v41 }
  0x4d   :  { %4417 = vmatprep.subr.bf16.mxu0 %v4416_v42  ;;  %4447 = vmatpush3.bf16.msra.mxu1 %v4444_v63 }
  0x4e   :  { %4449 = vmatprep.subr.bf16.mxu1 %v4448_v4 }
  0x50   :  { %4419 = vmatpush1.bf16.msra.mxu0 %v4418_v50 }
  0x51   :  { %4421 = vmatprep.subr.bf16.mxu0 %v4420_v51  ;;  %4451 = vmatpush3.bf16.msra.mxu1 %v4448_v4 }
  0x52   :  { %4453 = vmatprep.subr.bf16.mxu1 %v4452_v7 }
  0x54   :  { %4423 = vmatpush1.bf16.msra.mxu0 %v4422_v59 }
  0x55   :  { %4425 = vmatprep.subr.bf16.mxu0 %v4424_v60  ;;  %4455 = vmatpush3.bf16.msra.mxu1 %v4452_v7 }
  0x56   :  { %4457 = vmatprep.subr.bf16.mxu1 %v4456_v11 }
  0x58   :  { %4427 = vmatpush1.bf16.msra.mxu0 %v4426_v3 }
  0x59   :  { %4459 = vmatpush3.bf16.msra.mxu1 %v4456_v11 }
  0x5b   :  { %188 = vmatmul.mubr.f32.vlgmr.msra.gmra.mrb[0].mxu0 %v5188_v26  ;;  %v319_v26 = vsub.s32 2, %v5195_v15 }
  0x5c   :  { %193 = vmatprep.mubr.f32.mxu0 %v5119_v0  ;;  %4129 = vmatmul.mubr.f32.vlgmr.msra.gmra.mrb[0].mxu1 %v55_v10 }
  0x5d   :  { %4131 = vmatprep.mubr.f32.mxu1 %v56_v12  ;;  %v320_v34 = vrot.slane %v122_v17, %v319_v26 }
  0x5f   :  { %194 = vmatmul.mubr.f32.gmra.mrb[2].mxu0 %v55_v10 }
  0x60   :  { %199 = vmatprep.mubr.f32.mxu0 %v5119_v0  ;;  %4132 = vmatmul.mubr.f32.gmra.mrb[2].mxu1 %v57_v13 }
  0x63   :  { %200 = vmatmul.mubr.f32.gmra.mrb[4].mxu0 %v56_v12 }
  0x64   :  { %205 = vmatprep.mubr.f32.mxu0 %v5119_v0 }
  0x67   :  { %206 = vmatmul.mubr.f32.gmra.mrb[6].mxu0 %v57_v13 }
 0x12e   :  { %v189_v20 = vpop.f32.mrb[0].mxu0 }
 0x12f   :  { %v301_v21 = vadd.f32 %v300_v18, %v189_v20  ;;  %v191_v22 = vpop.f32.mrb[1].mxu0  ;;  %v4130_v38 = vpop.f32.mrb[0].mxu1 }
 0x130   :  { %v313_v27 = vadd.f32 %v312_v23, %v191_v22  ;;  %v5216_v40 = vadd.f32 %v4130_v38, %v320_v34  ;;  %v278_v41 = vpop.f32.mrb[1].mxu1 }
 0x131   :  { %v5199_v0 = vmul.f32 0.25, %v301_v21  ;;  %v5218_v44 = vadd.f32 %v320_v34, %v278_v41 }
 0x132   :  { %v195_v24 = vpop.f32.mrb[2].mxu0 }
 0x133   :  { %v197_v25 = vpop.f32.mrb[3].mxu0  ;;  %4138 = vmatprep.mubr.msk.f32.mxu1 %vm325_vm0, %v5199_v0  ;;  %v302_v35 = vadd.f32 %v300_v18, %v195_v24  ;;  %v4133_v48 = vpop.f32.mrb[2].mxu1  ;;  %v4472_v49 = vpack.c.bf16 %v5216_v40, %v5218_v44 }
 0x134   :  { %v314_v28 = vadd.f32 %v312_v23, %v197_v25  ;;  %v324_v51 = vadd.f32 %v4133_v48, %v320_v34  ;;  %v288_v52 = vpop.f32.mrb[3].mxu1 }
 0x135   :  { %v5220_v45 = vmul.f32 0.25, %v302_v35  ;;  %v323_v53 = vadd.f32 %v320_v34, %v288_v52 }
 0x136   :  { %v201_v30 = vpop.f32.mrb[4].mxu0  ;;  %v4460_v31 = vpack.c.bf16 %v314_v28, %v313_v27  ;;  %v5210_v32 = vpack.i.bf16 %v314_v28, %v313_v27 }
 0x137   :  { %v203_v33 = vpop.f32.mrb[5].mxu0  ;;  %v303_v36 = vadd.f32 %v300_v18, %v201_v30  ;;  %v5240_v56 = vpack.c.bf16 %v324_v51, %v323_v53  ;;  %v5242_v57 = vpack.i.bf16 %v324_v51, %v323_v53 }
 0x138   :  { %4462 = vmatprep.subr.msk.bf16.mxu1 %vm5206_vm1, %v4460_v31  ;;  %v315_v42 = vadd.f32 %v312_v23, %v203_v33 }
 0x139   :  { %4465 = vmatpush3.bf16.xpose.msk.msra.mxu1 %vm5206_vm1, %v4460_v31  ;;  %v5222_v46 = vmul.f32 0.25, %v303_v36 }
 0x13a   :  { %v207_v37 = vpop.f32.mrb[6].mxu0 }
 0x13b   :  { %v209_v39 = vpop.f32.mrb[7].mxu0  ;;  %v304_v54 = vadd.f32 %v300_v18, %v207_v37 }
 0x13c   :  { %v316_v43 = vadd.f32 %v312_v23, %v209_v39 }
 0x13d   :  { %v5236_v55 = vmul.f32 0.25, %v304_v54 }
 0x13e   :  { %v4466_v47 = vpack.c.bf16 %v316_v43, %v315_v42  ;;  %v5226_v50 = vpack.i.bf16 %v316_v43, %v315_v42 }
 0x140   :  { %4139 = vmatmul.mubr.msk.f32.vlgmr.msra.gmra.mrb[4].mxu1 %vm325_vm0, %v5220_v45  ;;  %4468 = vmatprep.subr.msk.bf16.mxu1 %vm5206_vm1, %v4466_v47 }
 0x141   :  { %4471 = vmatpush3.bf16.xpose.msk.msra.mxu1 %vm5206_vm1, %v4466_v47  ;;  %4145 = vmatprep.mubr.msk.f32.mxu1 %vm325_vm0, %v5222_v46 }
 0x142   :  { %4473 = vmatprep.subr.bf16.mxu1 %v4472_v49 }
 0x148   :  { %4146 = vmatmul.mubr.msk.f32.vlgmr.msra.gmra.mrb[6].mxu1 %vm325_vm0, %v5236_v55 }
 0x149   :  { %4475 = vmatpush3.bf16.msra.mxu1 %v4472_v49 }
 0x14a   :  { %4477 = vmatprep.subr.bf16.mxu1 %v5240_v56 }
 0x213   :  { %v4140_v58 = vpop.f32.mrb[4].mxu1 }
 0x214   :  { %v404_v59 = vpop.f32.mrb[5].mxu1  ;;  %v503_v61 = vsel %vm325_vm0, %v4140_v58, -inf }
 0x215   :  { %v500_v60 = vsel %vm325_vm0, %v404_v59, -inf }
 0x216   :  { %501 = vmax.xlane.f32.xlu0 %v500_v60 }
 0x21a   :  { %504 = vmax.xlane.f32.xlu0 %v503_v61 }
 0x21b   :  { %v4147_v62 = vpop.f32.mrb[6].mxu1 }
 0x21c   :  { %v491_v63 = vpop.f32.mrb[7].mxu1  ;;  %v509_v2 = vsel %vm325_vm0, %v4147_v62, -inf }
 0x21d   :  { %v506_v1 = vsel %vm325_vm0, %v491_v63, -inf }
 0x21e   :  { %507 = vmax.xlane.f32.xlu1 %v506_v1 }
 0x222   :  { %510 = vmax.xlane.f32.xlu1 %v509_v2 }
 0x2a3   :  { %v502_v3 = vpop.xlane.xlu0 %501 }
 0x2a4   :  { %v512_v4 = vsub.f32 %v404_v59, %v502_v3 }
 0x2a6   :  { %v516_v5 = vmul.f32 1.442695, %v512_v4 }
 0x2a7   :  { %v505_v6 = vpop.xlane.xlu0 %504 }
 0x2a8   :  { %4877 = vpow2.f32 %v516_v5  ;;  %v513_v7 = vsub.f32 %v4140_v58, %v505_v6 }
 0x2aa   :  { %v518_v8 = vmul.f32 1.442695, %v513_v7 }
 0x2ab   :  { %v508_v9 = vpop.xlane.xlu1 %507 }
 0x2ac   :  { %4879 = vpow2.f32 %v518_v8  ;;  %v514_v10 = vsub.f32 %v491_v63, %v508_v9 }
 0x2ae   :  { %v520_v11 = vmul.f32 1.442695, %v514_v10 }
 0x2af   :  { %v511_v12 = vpop.xlane.xlu1 %510 }
 0x2b0   :  { %4881 = vpow2.f32 %v520_v11  ;;  %v515_v13 = vsub.f32 %v4147_v62, %v511_v12 }
 0x2b2   :  { %v4878_v14 = vpop.eup %4877  ;;  %v522_v16 = vmul.f32 1.442695, %v515_v13 }
 0x2b3   :  { %v524_v17 = vsel %vm325_vm0, %v4878_v14, 0.0 }
 0x2b4   :  { %4883 = vpow2.f32 %v522_v16  ;;  %525 = vadd.xlane.f32.xlu0 %v524_v17 }
 0x2b6   :  { %v4880_v18 = vpop.eup %4879 }
 0x2b7   :  { %v527_v19 = vsel %vm325_vm0, %v4880_v18, 0.0 }
 0x2b8   :  { %528 = vadd.xlane.f32.xlu1 %v527_v19 }
 0x2ba   :  { %v4882_v20 = vpop.eup %4881 }
 0x2bb   :  { %v530_v21 = vsel %vm325_vm0, %v4882_v20, 0.0 }
 0x2bc   :  { %531 = vadd.xlane.f32.xlu0 %v530_v21 }
 0x2be   :  { %v4884_v22 = vpop.eup %4883 }
 0x2bf   :  { %v533_v23 = vsel %vm325_vm0, %v4884_v22, 0.0 }
 0x2c0   :  { %534 = vadd.xlane.f32.xlu1 %v533_v23 }
 0x2d1   :  { %797 = vrot.lane.b32.xlu1 %v5222_v46, %s5120_s2 }
 0x2d2   :  { %4668 = vrot.lane.b32.xlu0 %v5226_v50, %s5120_s2 }
 0x2d5   :  { %799 = vrot.lane.b32.xlu1 %v5236_v55, %s5120_s2 }
 0x341   :  { %v526_v24 = vpop.xlane.xlu0 %525 }
 0x342   :  { %4885 = vrcp.f32 %v526_v24 }
 0x345   :  { %v529_v25 = vpop.xlane.xlu1 %528 }
 0x346   :  { %4887 = vrcp.f32 %v529_v25 }
 0x349   :  { %v532_v26 = vpop.xlane.xlu0 %531 }
 0x34a   :  { %4889 = vrcp.f32 %v532_v26 }
 0x34c   :  { %v4886_v27 = vpop.eup %4885 }
 0x34d   :  { %v4669_v28 = vpop.permute.xlu0 %4668  ;;  %v535_v30 = vpop.xlane.xlu1 %534  ;;  %v537_v31 = vmul.f32 %v4886_v27, %v4878_v14 }
 0x34e   :  { %4891 = vrcp.f32 %v535_v30  ;;  %v4671_v33 = vunpack.i.h.bf16 %v4669_v28  ;;  %v4670_v34 = vunpack.i.l.bf16 %v4669_v28 }
 0x34f   :  { %4152 = vmatprep.mubr.msk.f32.mxu1 %vm325_vm0, %v537_v31 }
 0x350   :  { %v4888_v35 = vpop.eup %4887  ;;  %v4486_v37 = vpack.c.bf16 %v4671_v33, %v4670_v34 }
 0x351   :  { %v539_v36 = vmul.f32 %v4888_v35, %v4880_v18  ;;  %v798_v43 = vpop.permute.xlu1 %797 }
 0x353   :  { %4153 = vmatmul.mubr.msk.f32.vlgmr.msra.gmra.mrb[8].mxu1 %vm325_vm0, %v539_v36 }
 0x354   :  { %v4890_v38 = vpop.eup %4889  ;;  %4479 = vmatpush3.bf16.msra.mxu1 %v5240_v56 }
 0x355   :  { %4488 = vmatprep.subr.msk.bf16.mxu1 %vm5206_vm1, %v4486_v37  ;;  %v541_v39 = vmul.f32 %v4890_v38, %v4882_v20  ;;  %v800_v47 = vpop.permute.xlu1 %799 }
 0x357   :  { %4159 = vmatprep.mubr.msk.f32.mxu1 %vm325_vm0, %v541_v39 }
 0x358   :  { %v4892_v41 = vpop.eup %4891 }
 0x359   :  { %v543_v42 = vmul.f32 %v4892_v41, %v4884_v22 }
 0x35b   :  { %4160 = vmatmul.mubr.msk.f32.vlgmr.msra.gmra.mrb[10].mxu1 %vm325_vm0, %v543_v42 }
 0x35c   :  { %4173 = vmatprep.mubr.msk.f32.mxu1 %vm325_vm0, %v798_v43 }
 0x35d   :  { %4491 = vmatpush3.bf16.xpose.msk.msra.mxu1 %vm5206_vm1, %v4486_v37 }
 0x364   :  { %4174 = vmatmul.mubr.msk.f32.vlgmr.msra.gmra.mrb[12].mxu1 %vm325_vm0, %v800_v47 }
 0x426   :  { %v5270_v48 = vpop.f32.mrb[8].mxu1 }
 0x427   :  { %v5272_v49 = vpop.f32.mrb[9].mxu1 }
 0x42e   :  { %v5274_v51 = vpop.f32.mrb[10].mxu1 }
 0x42f   :  { %v5276_v52 = vpop.f32.mrb[11].mxu1 }
 0x437   :  { %v4175_v53 = vpop.f32.mrb[12].mxu1 }
 0x438   :  { %v879_v54 = vpop.f32.mrb[13].mxu1  ;;  %v897_v56 = vsel %vm325_vm0, %v4175_v53, -inf }
 0x439   :  { %898 = vmax.xlane.f32.xlu0 %v897_v56  ;;  %v894_v58 = vsel %vm325_vm0, %v879_v54, -inf }
 0x43a   :  { %895 = vmax.xlane.f32.xlu1 %v894_v58 }
 0x44b   :  { %4673 = vrot.lane.b32.xlu1 %v5242_v57, %s5120_s2 }
 0x44f   :  { %4683 = vrot.lane.b32.xlu1 %v5210_v32, %s5121_s24 }
 0x453   :  { %706 = vrot.lane.b32.xlu1 %v5199_v0, %s5120_s2 }
 0x457   :  { %708 = vrot.lane.b32.xlu1 %v5220_v45, %s5120_s2 }
 0x45b   :  { %1110 = vrot.lane.b32.xlu1 %v5199_v0, %s5121_s24 }
 0x45f   :  { %1201 = vrot.lane.b32.xlu1 %v5222_v46, %s5121_s24 }
 0x4c6   :  { %v899_v59 = vpop.xlane.xlu0 %898 }
 0x4c7   :  { %v903_v60 = vsub.f32 %v4175_v53, %v899_v59  ;;  %v896_v61 = vpop.xlane.xlu1 %895 }
 0x4c8   :  { %v902_v62 = vsub.f32 %v879_v54, %v896_v61 }
 0x4c9   :  { %v910_v63 = vmul.f32 1.442695, %v903_v60 }
 0x4ca   :  { %v908_v1 = vmul.f32 1.442695, %v902_v62 }
 0x4cb   :  { %4893 = vpow2.f32 %v910_v63  ;;  %v4674_v2 = vpop.permute.xlu1 %4673 }
 0x4cc   :  { %v4676_v3 = vunpack.i.h.bf16 %v4674_v2  ;;  %v4675_v4 = vunpack.i.l.bf16 %v4674_v2  ;;  %4895 = vpow2.f32 %v908_v1 }
 0x4ce   :  { %v4496_v5 = vpack.c.bf16 %v4676_v3, %v4675_v4 }
 0x4cf   :  { %v4684_v6 = vpop.permute.xlu1 %4683 }
 0x4d0   :  { %v4686_v7 = vunpack.i.h.bf16 %v4684_v6  ;;  %v4685_v8 = vunpack.i.l.bf16 %v4684_v6  ;;  %4497 = vmatprep.subr.bf16.mxu1 %v4496_v5 }
 0x4d1   :  { %4499 = vmatpush3.bf16.msra.mxu1 %v4496_v5 }
 0x4d2   :  { %v4500_v9 = vpack.c.bf16 %v4686_v7, %v4685_v8 }
 0x4d3   :  { %v707_v10 = vpop.permute.xlu1 %706 }
 0x4d4   :  { %4166 = vmatprep.mubr.msk.f32.mxu0 %vm325_vm0, %v707_v10  ;;  %4502 = vmatprep.subr.msk.bf16.mxu1 %vm5206_vm1, %v4500_v9 }
 0x4d5   :  { %v4894_v11 = vpop.eup %4893 }
 0x4d6   :  { %v921_v12 = vsel %vm325_vm0, %v4894_v11, 0.0  ;;  %v4896_v13 = vpop.eup %4895 }
 0x4d7   :  { %922 = vadd.xlane.f32.xlu0 %v921_v12  ;;  %v918_v14 = vsel %vm325_vm0, %v4896_v13, 0.0  ;;  %v709_v23 = vpop.permute.xlu1 %708 }
 0x4db   :  { %919 = vadd.xlane.f32.xlu0 %v918_v14  ;;  %v1111_v31 = vpop.permute.xlu1 %1110 }
 0x4df   :  { %v1202_v35 = vpop.permute.xlu1 %1201 }
 0x4f1   :  { %4678 = vrot.lane.b32.xlu0 %v5210_v32, %s5120_s2 }
 0x4f5   :  { %4688 = vrot.lane.b32.xlu0 %v5226_v50, %s5121_s24 }
 0x4f9   :  { %1112 = vrot.lane.b32.xlu0 %v5220_v45, %s5121_s24 }
 0x4fd   :  { %1203 = vrot.lane.b32.xlu0 %v5236_v55, %s5121_s24 }
 0x564   :  { %v923_v16 = vpop.xlane.xlu0 %922 }
 0x565   :  { %4897 = vrcp.f32 %v923_v16 }
 0x568   :  { %v920_v17 = vpop.xlane.xlu0 %919 }
 0x569   :  { %4899 = vrcp.f32 %v920_v17 }
 0x56c   :  { %v4679_v18 = vpop.permute.xlu0 %4678 }
 0x56d   :  { %v4681_v19 = vunpack.i.h.bf16 %v4679_v18  ;;  %v4680_v20 = vunpack.i.l.bf16 %v4679_v18 }
 0x56f   :  { %v4480_v21 = vpack.c.bf16 %v4681_v19, %v4680_v20  ;;  %v4898_v24 = vpop.eup %4897 }
 0x570   :  { %v4689_v22 = vpop.permute.xlu0 %4688  ;;  %v931_v30 = vmul.f32 %v4898_v24, %v4894_v11 }
 0x571   :  { %4482 = vmatprep.subr.msk.bf16.mxu0 %vm5206_vm1, %v4480_v21  ;;  %v4691_v26 = vunpack.i.h.bf16 %v4689_v22  ;;  %v4690_v27 = vunpack.i.l.bf16 %v4689_v22 }
 0x572   :  { %4485 = vmatpush3.bf16.xpose.msk.msra.mxu0 %vm5206_vm1, %v4480_v21 }
 0x573   :  { %v4900_v25 = vpop.eup %4899  ;;  %v4506_v33 = vpack.c.bf16 %v4691_v26, %v4690_v27 }
 0x574   :  { %v929_v28 = vmul.f32 %v4900_v25, %v4896_v13  ;;  %v1113_v34 = vpop.permute.xlu0 %1112 }
 0x576   :  { %4187 = vmatprep.mubr.msk.f32.mxu1 %vm325_vm0, %v929_v28 }
 0x577   :  { %4188 = vmatmul.mubr.msk.f32.vlgmr.msra.gmra.mrb[14].mxu1 %vm325_vm0, %v931_v30 }
 0x578   :  { %4505 = vmatpush3.bf16.xpose.msk.msra.mxu1 %vm5206_vm1, %v4500_v9  ;;  %4194 = vmatprep.mubr.msk.f32.mxu1 %vm325_vm0, %v1111_v31  ;;  %v1204_v36 = vpop.permute.xlu0 %1203  ;;  %v5342_v9 = vpack.i.bf16 %v5216_v40, %v5218_v44 }
 0x579   :  { %4508 = vmatprep.subr.msk.bf16.mxu1 %vm5206_vm1, %v4506_v33  ;;  %4167 = vmatmul.mubr.msk.f32.vlgmr.msra.gmra.mrb[8].mxu0 %vm325_vm0, %v709_v23 }
 0x57f   :  { %4195 = vmatmul.mubr.msk.f32.vlgmr.msra.gmra.mrb[16].mxu1 %vm325_vm0, %v1113_v34 }
 0x580   :  { %4511 = vmatpush3.bf16.xpose.msk.msra.mxu1 %vm5206_vm1, %v4506_v33  ;;  %4201 = vmatprep.mubr.msk.f32.mxu1 %vm325_vm0, %v1202_v35 }
 0x587   :  { %4202 = vmatmul.mubr.msk.f32.vlgmr.msra.gmra.mrb[18].mxu1 %vm325_vm0, %v1204_v36 }
 0x64a   :  { %v5322_v37 = vpop.f32.mrb[14].mxu1 }
 0x64b   :  { %v5324_v38 = vpop.f32.mrb[15].mxu1 }
 0x64c   :  { %v4827_v39 = vpack.i.bf16 %v5322_v37, %v5324_v38  ;;  %v4168_v41 = vpop.f32.mrb[8].mxu0 }
 0x64d   :  { %v788_v42 = vpop.f32.mrb[9].mxu0  ;;  %v891_v43 = vsel %vm325_vm0, %v4168_v41, -inf }
 0x64e   :  { %892 = vmax.xlane.f32.xlu0 %v891_v43  ;;  %v888_v47 = vsel %vm325_vm0, %v788_v42, -inf }
 0x64f   :  { %889 = vmax.xlane.f32.xlu1 %v888_v47 }
 0x652   :  { %v4196_v53 = vpop.f32.mrb[16].mxu1 }
 0x653   :  { %v1192_v54 = vpop.f32.mrb[17].mxu1  ;;  %v1295_v58 = vsel %vm325_vm0, %v4196_v53, -inf }
 0x654   :  { %v1292_v56 = vsel %vm325_vm0, %v1192_v54, -inf }
 0x655   :  { %1293 = vmax.xlane.f32.xlu0 %v1292_v56 }
 0x659   :  { %1296 = vmax.xlane.f32.xlu0 %v1295_v58 }
 0x65a   :  { %v4203_v59 = vpop.f32.mrb[18].mxu1 }
 0x65b   :  { %v5332_v60 = vpop.f32.mrb[19].mxu1  ;;  %v1301_v61 = vsel %vm325_vm0, %v4203_v59, -inf }
 0x65c   :  { %v1298_v20 = vsel %vm325_vm0, %v5332_v60, -inf }
 0x65d   :  { %1302 = vmax.xlane.f32.xlu0 %v1301_v61 }
 0x6db   :  { %v893_v62 = vpop.xlane.xlu0 %892 }
 0x6dc   :  { %v901_v63 = vsub.f32 %v4168_v41, %v893_v62  ;;  %v890_v1 = vpop.xlane.xlu1 %889 }
 0x6dd   :  { %v900_v2 = vsub.f32 %v788_v42, %v890_v1 }
 0x6de   :  { %v906_v3 = vmul.f32 1.442695, %v901_v63 }
 0x6df   :  { %v904_v4 = vmul.f32 1.442695, %v900_v2 }
 0x6e0   :  { %4901 = vpow2.f32 %v906_v3 }
 0x6e1   :  { %4903 = vpow2.f32 %v904_v4 }
 0x6e2   :  { %v1294_v10 = vpop.xlane.xlu0 %1293 }
 0x6e3   :  { %v1304_v21 = vsub.f32 %v1192_v54, %v1294_v10 }
 0x6e5   :  { %v1308_v22 = vmul.f32 1.442695, %v1304_v21 }
 0x6e6   :  { %v1297_v11 = vpop.xlane.xlu0 %1296 }
 0x6e7   :  { %v1305_v12 = vsub.f32 %v4196_v53, %v1297_v11 }
 0x6e9   :  { %v1310_v14 = vmul.f32 1.442695, %v1305_v12 }
 0x6ea   :  { %v5335_v5 = vpop.eup %4901  ;;  %v1303_v13 = vpop.xlane.xlu0 %1302 }
 0x6eb   :  { %v4904_v6 = vpop.eup %4903  ;;  %v915_v7 = vsel %vm325_vm0, %v5335_v5, 0.0  ;;  %v1307_v40 = vsub.f32 %v4203_v59, %v1303_v13  ;;  %4905 = vpow2.f32 %v1310_v14 }
 0x6ec   :  { %916 = vadd.xlane.f32.xlu0 %v915_v7  ;;  %v912_v8 = vsel %vm325_vm0, %v4904_v6, 0.0 }
 0x6ed   :  { %913 = vadd.xlane.f32.xlu1 %v912_v8  ;;  %v1314_v44 = vmul.f32 1.442695, %v1307_v40 }
 0x6ef   :  { %4907 = vpow2.f32 %v1314_v44 }
 0x6f0   :  { %4909 = vpow2.f32 %v1308_v22 }
 0x6f5   :  { %v5352_v16 = vpop.eup %4905 }
 0x6f6   :  { %v1319_v17 = vsel %vm325_vm0, %v5352_v16, 0.0 }
 0x6f9   :  { %v5356_v18 = vpop.eup %4907 }
 0x6fa   :  { %v1325_v19 = vsel %vm325_vm0, %v5356_v18, 0.0  ;;  %v4910_v23 = vpop.eup %4909 }
 0x6fb   :  { %v1316_v24 = vsel %vm325_vm0, %v4910_v23, 0.0 }
 0x6fe   :  { %4693 = vrot.lane.b32.xlu1 %v5342_v9, %s5120_s2 }
 0x702   :  { %4703 = vrot.lane.b32.xlu1 %v5242_v57, %s5121_s24  ;;  %4698 = vrot.lane.b32.xlu0 %v5342_v9, %s5121_s24 }
 0x706   :  { %4708 = vrot.lane.b32.xlu1 %v5210_v32, %s5122_s25 }
 0x721   :  { %1320 = vadd.xlane.f32.xlu0 %v1319_v17 }
 0x725   :  { %1326 = vadd.xlane.f32.xlu0 %v1325_v19 }
 0x72a   :  { %1299 = vmax.xlane.f32.xlu1 %v1298_v20 }
 0x73b   :  { %1510 = vrot.lane.b32.xlu0 %v5199_v0, %s5122_s25  ;;  %4713 = vrot.lane.b32.xlu1 %v5226_v50, %s5122_s25 }
 0x73f   :  { %1601 = vrot.lane.b32.xlu0 %v5222_v46, %s5122_s25 }
 0x75f   :  { %1317 = vadd.xlane.f32.xlu1 %v1316_v24 }
 0x770   :  { %1512 = vrot.lane.b32.xlu1 %v5220_v45, %s5122_s25 }
 0x779   :  { %v917_v25 = vpop.xlane.xlu0 %916 }
 0x77a   :  { %4911 = vrcp.f32 %v917_v25  ;;  %v914_v26 = vpop.xlane.xlu1 %913 }
 0x77b   :  { %4913 = vrcp.f32 %v914_v26 }
 0x77d   :  { %v4699_v27 = vpop.permute.xlu0 %4698 }
 0x77e   :  { %v4694_v28 = vpop.permute.xlu1 %4693  ;;  %v4701_v30 = vunpack.i.h.bf16 %v4699_v27  ;;  %v4700_v31 = vunpack.i.l.bf16 %v4699_v27 }
 0x77f   :  { %v4696_v33 = vunpack.i.h.bf16 %v4694_v28  ;;  %v4695_v34 = vunpack.i.l.bf16 %v4694_v28 }
 0x780   :  { %v4512_v43 = vpack.c.bf16 %v4701_v30, %v4700_v31 }
 0x781   :  { %v4492_v35 = vpack.c.bf16 %v4696_v33, %v4695_v34 }
 0x782   :  { %v4704_v36 = vpop.permute.xlu1 %4703 }
 0x783   :  { %v4706_v41 = vunpack.i.h.bf16 %v4704_v36  ;;  %v4705_v42 = vunpack.i.l.bf16 %v4704_v36  ;;  %4493 = vmatprep.subr.bf16.mxu0 %v4492_v35 }
 0x784   :  { %v4912_v47 = vpop.eup %4911  ;;  %4495 = vmatpush3.bf16.msra.mxu0 %v4492_v35 }
 0x785   :  { %v4914_v53 = vpop.eup %4913  ;;  %4513 = vmatprep.subr.bf16.mxu0 %v4512_v43  ;;  %v4516_v54 = vpack.c.bf16 %v4706_v41, %v4705_v42  ;;  %v927_v62 = vmul.f32 %v4912_v47, %v5335_v5 }
 0x786   :  { %v4709_v56 = vpop.permute.xlu1 %4708  ;;  %v925_v58 = vmul.f32 %v4914_v53, %v4904_v6 }
 0x787   :  { %v4711_v59 = vunpack.i.h.bf16 %v4709_v56  ;;  %v4710_v61 = vunpack.i.l.bf16 %v4709_v56  ;;  %4517 = vmatprep.subr.bf16.mxu1 %v4516_v54 }
 0x788   :  { %4180 = vmatprep.mubr.msk.f32.mxu0 %vm325_vm0, %v925_v58  ;;  %4519 = vmatpush3.bf16.msra.mxu1 %v4516_v54 }
 0x789   :  { %v4520_v63 = vpack.c.bf16 %v4711_v59, %v4710_v61  ;;  %4181 = vmatmul.mubr.msk.f32.vlgmr.msra.gmra.mrb[10].mxu0 %vm325_vm0, %v927_v62 }
 0x78a   :  { %4515 = vmatpush3.bf16.msra.mxu0 %v4512_v43 }
 0x78b   :  { %4522 = vmatprep.subr.msk.bf16.mxu0 %vm5206_vm1, %v4520_v63 }
 0x7ae   :  { %v1321_v11 = vpop.xlane.xlu0 %1320 }
 0x7b7   :  { %v1300_v1 = vpop.xlane.xlu1 %1299 }
 0x7b8   :  { %v1306_v2 = vsub.f32 %v5332_v60, %v1300_v1  ;;  %v1327_v60 = vpop.xlane.xlu0 %1326 }
 0x7ba   :  { %v1312_v3 = vmul.f32 1.442695, %v1306_v2 }
 0x7bb   :  { %v4714_v4 = vpop.permute.xlu1 %4713 }
 0x7bc   :  { %4915 = vpow2.f32 %v1312_v3  ;;  %v4716_v6 = vunpack.i.h.bf16 %v4714_v4  ;;  %v4715_v7 = vunpack.i.l.bf16 %v4714_v4  ;;  %v1511_v17 = vpop.permute.xlu0 %1510 }
 0x7bd   :  { %4917 = vrcp.f32 %v1321_v11 }
 0x7be   :  { %v4526_v8 = vpack.c.bf16 %v4716_v6, %v4715_v7 }
 0x7c0   :  { %4528 = vmatprep.subr.msk.bf16.mxu1 %vm5206_vm1, %v4526_v8  ;;  %v1602_v27 = vpop.permute.xlu0 %1601 }
 0x7c6   :  { %v4916_v5 = vpop.eup %4915 }
 0x7c7   :  { %v1322_v10 = vsel %vm325_vm0, %v4916_v5, 0.0  ;;  %v4918_v13 = vpop.eup %4917 }
 0x7c8   :  { %1323 = vadd.xlane.f32.xlu1 %v1322_v10  ;;  %v1331_v44 = vmul.f32 %v4918_v13, %v5352_v16 }
 0x7d9   :  { %1603 = vrot.lane.b32.xlu1 %v5236_v55, %s5122_s25 }
 0x7ec   :  { %v1318_v12 = vpop.xlane.xlu1 %1317 }
 0x7ed   :  { %4919 = vrcp.f32 %v1318_v12 }
 0x7ee   :  { %4921 = vrcp.f32 %v1327_v60 }
 0x7f0   :  { %v1513_v19 = vpop.permute.xlu1 %1512 }
 0x7f7   :  { %v4920_v14 = vpop.eup %4919 }
 0x7f8   :  { %v1329_v40 = vmul.f32 %v4920_v14, %v4910_v23  ;;  %v4922_v23 = vpop.eup %4921 }
 0x7f9   :  { %v1335_v26 = vmul.f32 %v4922_v23, %v5356_v18 }
 0x7fa   :  { %4208 = vmatprep.mubr.msk.f32.mxu0 %vm325_vm0, %v1329_v40 }
 0x7fb   :  { %4209 = vmatmul.mubr.msk.f32.vlgmr.msra.gmra.mrb[12].mxu0 %vm325_vm0, %v1331_v44 }
 0x7fc   :  { %4525 = vmatpush3.bf16.xpose.msk.msra.mxu0 %vm5206_vm1, %v4520_v63  ;;  %4222 = vmatprep.mubr.msk.f32.mxu0 %vm325_vm0, %v1511_v17 }
 0x803   :  { %4223 = vmatmul.mubr.msk.f32.vlgmr.msra.gmra.mrb[14].mxu0 %vm325_vm0, %v1513_v19 }
 0x855   :  { %v1324_v20 = vpop.xlane.xlu1 %1323 }
 0x856   :  { %4923 = vrcp.f32 %v1324_v20 }
 0x859   :  { %v1604_v28 = vpop.permute.xlu1 %1603 }
 0x85c   :  { %v5389_v21 = vpop.f32.mrb[10].mxu0 }
 0x85d   :  { %v5391_v22 = vpop.f32.mrb[11].mxu0 }
 0x85e   :  { %v4807_v16 = vpack.i.bf16 %v5389_v21, %v5391_v22 }
 0x860   :  { %v4924_v24 = vpop.eup %4923 }
 0x861   :  { %v1333_v25 = vmul.f32 %v4924_v24, %v4916_v5 }
 0x863   :  { %4215 = vmatprep.mubr.msk.f32.mxu1 %vm325_vm0, %v1333_v25 }
 0x864   :  { %4216 = vmatmul.mubr.msk.f32.vlgmr.msra.gmra.mrb[20].mxu1 %vm325_vm0, %v1335_v26 }
 0x865   :  { %4531 = vmatpush3.bf16.xpose.msk.msra.mxu1 %vm5206_vm1, %v4526_v8  ;;  %4229 = vmatprep.mubr.msk.f32.mxu1 %vm325_vm0, %v1602_v27 }
 0x86c   :  { %4230 = vmatmul.mubr.msk.f32.vlgmr.msra.gmra.mrb[22].mxu1 %vm325_vm0, %v1604_v28 }
 0x8ce   :  { %v5402_v30 = vpop.f32.mrb[12].mxu0 }
 0x8cf   :  { %v5404_v31 = vpop.f32.mrb[13].mxu0 }
 0x8d0   :  { %v4812_v18 = vpack.i.bf16 %v5402_v30, %v5404_v31 }
 0x8d6   :  { %v4224_v33 = vpop.f32.mrb[14].mxu0 }
 0x8d7   :  { %v1592_v34 = vpop.f32.mrb[15].mxu0  ;;  %v1695_v35 = vsel %vm325_vm0, %v4224_v33, -inf }
 0x8d8   :  { %1696 = vmax.xlane.f32.xlu1 %v1695_v35  ;;  %v1692_v36 = vsel %vm325_vm0, %v1592_v34, -inf }
 0x8d9   :  { %1693 = vmax.xlane.f32.xlu0 %v1692_v36 }
 0x8e9   :  { %4723 = vrot.lane.b32.xlu1 %v5242_v57, %s5122_s25 }
 0x8ed   :  { %4728 = vrot.lane.b32.xlu1 %v5210_v32, %s5123_s26 }
 0x8f1   :  { %4733 = vrot.lane.b32.xlu1 %v5226_v50, %s5123_s26 }
 0x937   :  { %v5416_v41 = vpop.f32.mrb[20].mxu1 }
 0x938   :  { %v5418_v42 = vpop.f32.mrb[21].mxu1 }
 0x939   :  { %v4837_v43 = vpack.i.bf16 %v5416_v41, %v5418_v42 }
 0x93f   :  { %v4231_v47 = vpop.f32.mrb[22].mxu1 }
 0x940   :  { %v1683_v53 = vpop.f32.mrb[23].mxu1  ;;  %v1701_v56 = vsel %vm325_vm0, %v4231_v47, -inf }
 0x941   :  { %v1698_v54 = vsel %vm325_vm0, %v1683_v53, -inf }
 0x942   :  { %1699 = vmax.xlane.f32.xlu0 %v1698_v54 }
 0x946   :  { %1702 = vmax.xlane.f32.xlu0 %v1701_v56 }
 0x95c   :  { %4718 = vrot.lane.b32.xlu0 %v5342_v9, %s5122_s25 }
 0x965   :  { %v1697_v58 = vpop.xlane.xlu1 %1696 }
 0x966   :  { %v1705_v59 = vsub.f32 %v4224_v33, %v1697_v58  ;;  %v1694_v61 = vpop.xlane.xlu0 %1693 }
 0x967   :  { %v1704_v62 = vsub.f32 %v1592_v34, %v1694_v61 }
 0x968   :  { %v1710_v63 = vmul.f32 1.442695, %v1705_v59 }
 0x969   :  { %v1708_v1 = vmul.f32 1.442695, %v1704_v62  ;;  %v4724_v2 = vpop.permute.xlu1 %4723 }
 0x96a   :  { %4925 = vpow2.f32 %v1710_v63  ;;  %v4726_v3 = vunpack.i.h.bf16 %v4724_v2  ;;  %v4725_v4 = vunpack.i.l.bf16 %v4724_v2 }
 0x96b   :  { %4927 = vpow2.f32 %v1708_v1 }
 0x96c   :  { %v4536_v6 = vpack.c.bf16 %v4726_v3, %v4725_v4 }
 0x96d   :  { %v4729_v7 = vpop.permute.xlu1 %4728 }
 0x96e   :  { %4537 = vmatprep.subr.bf16.mxu1 %v4536_v6  ;;  %v4731_v24 = vunpack.i.h.bf16 %v4729_v7  ;;  %v4730_v26 = vunpack.i.l.bf16 %v4729_v7 }
 0x96f   :  { %4539 = vmatpush3.bf16.msra.mxu1 %v4536_v6 }
 0x970   :  { %v4540_v34 = vpack.c.bf16 %v4731_v24, %v4730_v26 }
 0x971   :  { %v4734_v8 = vpop.permute.xlu1 %4733 }
 0x972   :  { %v4736_v5 = vunpack.i.h.bf16 %v4734_v8  ;;  %v4735_v10 = vunpack.i.l.bf16 %v4734_v8 }
 0x974   :  { %v4926_v11 = vpop.eup %4925  ;;  %v4546_v12 = vpack.c.bf16 %v4736_v5, %v4735_v10 }
 0x975   :  { %v1719_v60 = vsel %vm325_vm0, %v4926_v11, 0.0  ;;  %v4928_v13 = vpop.eup %4927 }
 0x976   :  { %1720 = vadd.xlane.f32.xlu1 %v1719_v60  ;;  %4548 = vmatprep.subr.msk.bf16.mxu1 %vm5206_vm1, %v4546_v12  ;;  %v1716_v14 = vsel %vm325_vm0, %v4928_v13, 0.0 }
 0x97b   :  { %1717 = vadd.xlane.f32.xlu0 %v1716_v14 }
 0x9cf   :  { %v1700_v40 = vpop.xlane.xlu0 %1699 }
 0x9d0   :  { %v1706_v44 = vsub.f32 %v1683_v53, %v1700_v40 }
 0x9d2   :  { %v1712_v17 = vmul.f32 1.442695, %v1706_v44 }
 0x9d3   :  { %v1703_v19 = vpop.xlane.xlu0 %1702 }
 0x9d4   :  { %4929 = vpow2.f32 %v1712_v17  ;;  %v1707_v20 = vsub.f32 %v4231_v47, %v1703_v19 }
 0x9d6   :  { %v1714_v23 = vmul.f32 1.442695, %v1707_v20 }
 0x9d7   :  { %v4719_v25 = vpop.permute.xlu0 %4718 }
 0x9d8   :  { %4931 = vpow2.f32 %v1714_v23  ;;  %v4721_v27 = vunpack.i.h.bf16 %v4719_v25  ;;  %v4720_v28 = vunpack.i.l.bf16 %v4719_v25 }
 0x9da   :  { %v4532_v33 = vpack.c.bf16 %v4721_v27, %v4720_v28 }
 0x9dc   :  { %4533 = vmatprep.subr.bf16.mxu0 %v4532_v33 }
 0x9dd   :  { %4535 = vmatpush3.bf16.msra.mxu0 %v4532_v33 }
 0x9de   :  { %v4930_v35 = vpop.eup %4929  ;;  %4542 = vmatprep.subr.msk.bf16.mxu0 %vm5206_vm1, %v4540_v34 }
 0x9df   :  { %v1722_v36 = vsel %vm325_vm0, %v4930_v35, 0.0 }
 0x9e0   :  { %1723 = vadd.xlane.f32.xlu0 %v1722_v36 }
 0x9e2   :  { %v4932_v53 = vpop.eup %4931 }
 0x9e3   :  { %v1725_v47 = vsel %vm325_vm0, %v4932_v53, 0.0 }
 0x9e4   :  { %1726 = vadd.xlane.f32.xlu1 %v1725_v47 }
 0x9f5   :  { %1912 = vrot.lane.b32.xlu1 %v5220_v45, %s5123_s26 }
 0x9f6   :  { %1910 = vrot.lane.b32.xlu0 %v5199_v0, %s5123_s26 }
 0x9f9   :  { %2003 = vrot.lane.b32.xlu1 %v5236_v55, %s5123_s26 }
 0x9fa   :  { %2001 = vrot.lane.b32.xlu0 %v5222_v46, %s5123_s26 }
 0xa03   :  { %v1721_v54 = vpop.xlane.xlu1 %1720 }
 0xa04   :  { %4933 = vrcp.f32 %v1721_v54 }
 0xa08   :  { %v1718_v56 = vpop.xlane.xlu0 %1717 }
 0xa09   :  { %4935 = vrcp.f32 %v1718_v56 }
 0xa0e   :  { %v4934_v58 = vpop.eup %4933 }
 0xa0f   :  { %v1731_v62 = vmul.f32 %v4934_v58, %v4926_v11 }
 0xa13   :  { %v4936_v59 = vpop.eup %4935 }
 0xa14   :  { %v1729_v61 = vmul.f32 %v4936_v59, %v4928_v13 }
 0xa16   :  { %4236 = vmatprep.mubr.msk.f32.mxu0 %vm325_vm0, %v1729_v61 }
 0xa17   :  { %4237 = vmatmul.mubr.msk.f32.vlgmr.msra.gmra.mrb[16].mxu0 %vm325_vm0, %v1731_v62 }
 0xa18   :  { %4545 = vmatpush3.bf16.xpose.msk.msra.mxu0 %vm5206_vm1, %v4540_v34 }
 0xa6d   :  { %v1724_v63 = vpop.xlane.xlu0 %1723 }
 0xa6e   :  { %4937 = vrcp.f32 %v1724_v63 }
 0xa71   :  { %v1727_v1 = vpop.xlane.xlu1 %1726  ;;  %v1911_v2 = vpop.permute.xlu0 %1910 }
 0xa72   :  { %4939 = vrcp.f32 %v1727_v1  ;;  %4250 = vmatprep.mubr.msk.f32.mxu0 %vm325_vm0, %v1911_v2 }
 0xa75   :  { %v1913_v3 = vpop.permute.xlu1 %1912  ;;  %v2002_v5 = vpop.permute.xlu0 %2001 }
 0xa76   :  { %4251 = vmatmul.mubr.msk.f32.vlgmr.msra.gmra.mrb[18].mxu0 %vm325_vm0, %v1913_v3 }
 0xa78   :  { %v4938_v4 = vpop.eup %4937 }
 0xa79   :  { %v1733_v6 = vmul.f32 %v4938_v4, %v4930_v35  ;;  %v2004_v10 = vpop.permute.xlu1 %2003 }
 0xa7b   :  { %4243 = vmatprep.mubr.msk.f32.mxu1 %vm325_vm0, %v1733_v6 }
 0xa7c   :  { %v4940_v7 = vpop.eup %4939 }
 0xa7d   :  { %v1735_v8 = vmul.f32 %v4940_v7, %v4932_v53 }
 0xa7f   :  { %4244 = vmatmul.mubr.msk.f32.vlgmr.msra.gmra.mrb[24].mxu1 %vm325_vm0, %v1735_v8 }
 0xa80   :  { %4551 = vmatpush3.bf16.xpose.msk.msra.mxu1 %vm5206_vm1, %v4546_v12  ;;  %4257 = vmatprep.mubr.msk.f32.mxu1 %vm325_vm0, %v2002_v5 }
 0xa87   :  { %4258 = vmatmul.mubr.msk.f32.vlgmr.msra.gmra.mrb[26].mxu1 %vm325_vm0, %v2004_v10 }
 0xaea   :  { %v5454_v11 = vpop.f32.mrb[16].mxu0 }
 0xaeb   :  { %v5456_v60 = vpop.f32.mrb[17].mxu0 }
 0xaec   :  { %v4817_v13 = vpack.i.bf16 %v5454_v11, %v5456_v60 }
 0xb49   :  { %v4252_v14 = vpop.f32.mrb[18].mxu0 }
 0xb4a   :  { %v1992_v40 = vpop.f32.mrb[19].mxu0  ;;  %v2095_v44 = vsel %vm325_vm0, %v4252_v14, -inf }
 0xb4b   :  { %2096 = vmax.xlane.f32.xlu1 %v2095_v44  ;;  %v2092_v17 = vsel %vm325_vm0, %v1992_v40, -inf }
 0xb4c   :  { %2093 = vmax.xlane.f32.xlu0 %v2092_v17 }
 0xb52   :  { %v5462_v12 = vpop.f32.mrb[24].mxu1 }
 0xb53   :  { %v5464_v19 = vpop.f32.mrb[25].mxu1 }
 0xb54   :  { %v4847_v20 = vpack.i.bf16 %v5462_v12, %v5464_v19 }
 0xb5a   :  { %v4259_v23 = vpop.f32.mrb[26].mxu1 }
 0xb5b   :  { %v2083_v24 = vpop.f32.mrb[27].mxu1  ;;  %v2101_v26 = vsel %vm325_vm0, %v4259_v23, -inf }
 0xb5c   :  { %4743 = vrot.lane.b32.xlu1 %v5242_v57, %s5123_s26  ;;  %v2098_v25 = vsel %vm325_vm0, %v2083_v24, -inf }
 0xb5d   :  { %2099 = vmax.xlane.f32.xlu0 %v2098_v25 }
 0xb60   :  { %4748 = vrot.lane.b32.xlu1 %v5210_v32, %s5124_s27 }
 0xb61   :  { %2102 = vmax.xlane.f32.xlu0 %v2101_v26 }
 0xb64   :  { %4753 = vrot.lane.b32.xlu1 %v5226_v50, %s5124_s27 }
 0xb77   :  { %4738 = vrot.lane.b32.xlu0 %v5342_v9, %s5123_s26 }
 0xbd8   :  { %v2097_v27 = vpop.xlane.xlu1 %2096 }
 0xbd9   :  { %v2105_v28 = vsub.f32 %v4252_v14, %v2097_v27  ;;  %v2094_v33 = vpop.xlane.xlu0 %2093 }
 0xbda   :  { %v2104_v34 = vsub.f32 %v1992_v40, %v2094_v33 }
 0xbdb   :  { %v2110_v35 = vmul.f32 1.442695, %v2105_v28 }
 0xbdc   :  { %v2108_v36 = vmul.f32 1.442695, %v2104_v34  ;;  %v4744_v53 = vpop.permute.xlu1 %4743 }
 0xbdd   :  { %4941 = vpow2.f32 %v2110_v35  ;;  %v4746_v47 = vunpack.i.h.bf16 %v4744_v53  ;;  %v4745_v54 = vunpack.i.l.bf16 %v4744_v53 }
 0xbde   :  { %4943 = vpow2.f32 %v2108_v36 }
 0xbdf   :  { %v4556_v56 = vpack.c.bf16 %v4746_v47, %v4745_v54 }
 0xbe0   :  { %v4749_v58 = vpop.permute.xlu1 %4748 }
 0xbe1   :  { %4557 = vmatprep.subr.bf16.mxu1 %v4556_v56  ;;  %v4751_v40 = vunpack.i.h.bf16 %v4749_v58  ;;  %v4750_v17 = vunpack.i.l.bf16 %v4749_v58 }
 0xbe2   :  { %4559 = vmatpush3.bf16.msra.mxu1 %v4556_v56 }
 0xbe3   :  { %v4560_v28 = vpack.c.bf16 %v4751_v40, %v4750_v17 }
 0xbe4   :  { %v4754_v59 = vpop.permute.xlu1 %4753 }
 0xbe5   :  { %v4756_v61 = vunpack.i.h.bf16 %v4754_v59  ;;  %v4755_v62 = vunpack.i.l.bf16 %v4754_v59 }
 0xbe7   :  { %v4942_v63 = vpop.eup %4941  ;;  %v4566_v1 = vpack.c.bf16 %v4756_v61, %v4755_v62 }
 0xbe8   :  { %v4944_v2 = vpop.eup %4943  ;;  %v2119_v3 = vsel %vm325_vm0, %v4942_v63, 0.0 }
 0xbe9   :  { %2120 = vadd.xlane.f32.xlu1 %v2119_v3  ;;  %4568 = vmatprep.subr.msk.bf16.mxu1 %vm5206_vm1, %v4566_v1  ;;  %v2116_v4 = vsel %vm325_vm0, %v4944_v2, 0.0 }
 0xbea   :  { %v2100_v6 = vpop.xlane.xlu0 %2099  ;;  %2117 = vadd.xlane.f32.xlu0 %v2116_v4 }
 0xbeb   :  { %v2106_v7 = vsub.f32 %v2083_v24, %v2100_v6 }
 0xbed   :  { %v2112_v8 = vmul.f32 1.442695, %v2106_v7 }
 0xbee   :  { %v2103_v5 = vpop.xlane.xlu0 %2102 }
 0xbef   :  { %4945 = vpow2.f32 %v2112_v8  ;;  %v2107_v10 = vsub.f32 %v4259_v23, %v2103_v5 }
 0xbf1   :  { %v2114_v14 = vmul.f32 1.442695, %v2107_v10 }
 0xbf2   :  { %v4739_v44 = vpop.permute.xlu0 %4738 }
 0xbf3   :  { %4947 = vpow2.f32 %v2114_v14  ;;  %v4741_v25 = vunpack.i.h.bf16 %v4739_v44  ;;  %v4740_v26 = vunpack.i.l.bf16 %v4739_v44 }
 0xbf5   :  { %v4552_v27 = vpack.c.bf16 %v4741_v25, %v4740_v26 }
 0xbf7   :  { %4553 = vmatprep.subr.bf16.mxu0 %v4552_v27 }
 0xbf8   :  { %4555 = vmatpush3.bf16.msra.mxu0 %v4552_v27 }
 0xbf9   :  { %v4946_v33 = vpop.eup %4945  ;;  %4562 = vmatprep.subr.msk.bf16.mxu0 %vm5206_vm1, %v4560_v28 }
 0xbfa   :  { %v2122_v24 = vsel %vm325_vm0, %v4946_v33, 0.0 }
 0xbfb   :  { %2123 = vadd.xlane.f32.xlu0 %v2122_v24 }
 0xbfd   :  { %v4948_v34 = vpop.eup %4947 }
 0xbfe   :  { %v2125_v23 = vsel %vm325_vm0, %v4948_v34, 0.0 }
 0xbff   :  { %2126 = vadd.xlane.f32.xlu1 %v2125_v23 }
 0xc10   :  { %2312 = vrot.lane.b32.xlu1 %v5220_v45, %s5124_s27 }
 0xc11   :  { %2310 = vrot.lane.b32.xlu0 %v5199_v0, %s5124_s27 }
 0xc14   :  { %2403 = vrot.lane.b32.xlu1 %v5236_v55, %s5124_s27 }
 0xc15   :  { %2401 = vrot.lane.b32.xlu0 %v5222_v46, %s5124_s27 }
 0xc76   :  { %v2121_v35 = vpop.xlane.xlu1 %2120 }
 0xc77   :  { %4949 = vrcp.f32 %v2121_v35  ;;  %v2118_v36 = vpop.xlane.xlu0 %2117 }
 0xc78   :  { %4951 = vrcp.f32 %v2118_v36 }
 0xc81   :  { %v4950_v53 = vpop.eup %4949 }
 0xc82   :  { %v4952_v47 = vpop.eup %4951  ;;  %v2131_v56 = vmul.f32 %v4950_v53, %v4942_v63 }
 0xc83   :  { %v2129_v54 = vmul.f32 %v4952_v47, %v4944_v2 }
 0xc85   :  { %4264 = vmatprep.mubr.msk.f32.mxu0 %vm325_vm0, %v2129_v54 }
 0xc86   :  { %4265 = vmatmul.mubr.msk.f32.vlgmr.msra.gmra.mrb[20].mxu0 %vm325_vm0, %v2131_v56 }
 0xc87   :  { %4565 = vmatpush3.bf16.xpose.msk.msra.mxu0 %vm5206_vm1, %v4560_v28 }
 0xc88   :  { %v2124_v58 = vpop.xlane.xlu0 %2123 }
 0xc89   :  { %4953 = vrcp.f32 %v2124_v58 }
 0xc8c   :  { %v2127_v59 = vpop.xlane.xlu1 %2126  ;;  %v2311_v61 = vpop.permute.xlu0 %2310 }
 0xc8d   :  { %4955 = vrcp.f32 %v2127_v59  ;;  %4278 = vmatprep.mubr.msk.f32.mxu0 %vm325_vm0, %v2311_v61 }
 0xc90   :  { %v2313_v62 = vpop.permute.xlu1 %2312  ;;  %v2402_v6 = vpop.permute.xlu0 %2401 }
 0xc91   :  { %4279 = vmatmul.mubr.msk.f32.vlgmr.msra.gmra.mrb[22].mxu0 %vm325_vm0, %v2313_v62 }
 0xc93   :  { %v4954_v3 = vpop.eup %4953 }
 0xc94   :  { %v2133_v2 = vmul.f32 %v4954_v3, %v4946_v33  ;;  %v2404_v7 = vpop.permute.xlu1 %2403 }
 0xc96   :  { %4271 = vmatprep.mubr.msk.f32.mxu1 %vm325_vm0, %v2133_v2 }
 0xc97   :  { %v4956_v63 = vpop.eup %4955 }
 0xc98   :  { %v2135_v4 = vmul.f32 %v4956_v63, %v4948_v34 }
 0xc9a   :  { %4272 = vmatmul.mubr.msk.f32.vlgmr.msra.gmra.mrb[28].mxu1 %vm325_vm0, %v2135_v4 }
 0xc9b   :  { %4571 = vmatpush3.bf16.xpose.msk.msra.mxu1 %vm5206_vm1, %v4566_v1  ;;  %4285 = vmatprep.mubr.msk.f32.mxu1 %vm325_vm0, %v2402_v6 }
 0xca2   :  { %4286 = vmatmul.mubr.msk.f32.vlgmr.msra.gmra.mrb[30].mxu1 %vm325_vm0, %v2404_v7 }
 0xd59   :  { %v5506_v8 = vpop.f32.mrb[20].mxu0 }
 0xd5a   :  { %v5508_v5 = vpop.f32.mrb[21].mxu0 }
 0xd5b   :  { %v4822_v10 = vpack.i.bf16 %v5506_v8, %v5508_v5  ;;  %v106_v8 = vld [vmem:[#allocation5 + $0x18] sm:$0xff] }
 0xd5c   :  { %v107_v5 = vld [vmem:[#allocation5 + $0x38] sm:$0xff] }
 0xd64   :  { %v4280_v14 = vpop.f32.mrb[22].mxu0 }
 0xd65   :  { %v2392_v40 = vpop.f32.mrb[23].mxu0  ;;  %v2495_v44 = vsel %vm325_vm0, %v4280_v14, -inf }
 0xd66   :  { %2496 = vmax.xlane.f32.xlu1 %v2495_v44  ;;  %v2492_v17 = vsel %vm325_vm0, %v2392_v40, -inf }
 0xd67   :  { %2493 = vmax.xlane.f32.xlu0 %v2492_v17 }
 0xd6d   :  { %v5514_v1 = vpop.f32.mrb[28].mxu1 }
 0xd6e   :  { %v5516_v25 = vpop.f32.mrb[29].mxu1 }
 0xd6f   :  { %v4852_v26 = vpack.i.bf16 %v5514_v1, %v5516_v25  ;;  %v4620_v1 = vpack.c.bf16 %v107_v5, %v106_v8  ;;  %v109_v25 = vld [vmem:[#allocation5 + $0x78] sm:$0xff] }
 0xd75   :  { %v4287_v27 = vpop.f32.mrb[30].mxu1 }
 0xd76   :  { %v2483_v28 = vpop.f32.mrb[31].mxu1  ;;  %v2501_v24 = vsel %vm325_vm0, %v4287_v27, -inf }
 0xd77   :  { %4763 = vrot.lane.b32.xlu1 %v5242_v57, %s5124_s27  ;;  %v2498_v33 = vsel %vm325_vm0, %v2483_v28, -inf }
 0xd78   :  { %2499 = vmax.xlane.f32.xlu0 %v2498_v33 }
 0xd7b   :  { %4768 = vrot.lane.b32.xlu1 %v5210_v32, %s5114_s23 }
 0xd7c   :  { %2502 = vmax.xlane.f32.xlu0 %v2501_v24 }
 0xd7f   :  { %4773 = vrot.lane.b32.xlu1 %v5226_v50, %s5114_s23 }
 0xd92   :  { %4758 = vrot.lane.b32.xlu0 %v5342_v9, %s5124_s27 }
 0xdf3   :  { %v2497_v34 = vpop.xlane.xlu1 %2496 }
 0xdf4   :  { %v2505_v23 = vsub.f32 %v4280_v14, %v2497_v34  ;;  %v2494_v35 = vpop.xlane.xlu0 %2493 }
 0xdf5   :  { %v2504_v36 = vsub.f32 %v2392_v40, %v2494_v35 }
 0xdf6   :  { %v2510_v53 = vmul.f32 1.442695, %v2505_v23 }
 0xdf7   :  { %v2508_v47 = vmul.f32 1.442695, %v2504_v36  ;;  %v4764_v54 = vpop.permute.xlu1 %4763 }
 0xdf8   :  { %4957 = vpow2.f32 %v2510_v53  ;;  %v4766_v56 = vunpack.i.h.bf16 %v4764_v54  ;;  %v4765_v58 = vunpack.i.l.bf16 %v4764_v54 }
 0xdf9   :  { %4959 = vpow2.f32 %v2508_v47 }
 0xdfa   :  { %v4576_v59 = vpack.c.bf16 %v4766_v56, %v4765_v58 }
 0xdfb   :  { %v4769_v61 = vpop.permute.xlu1 %4768 }
 0xdfc   :  { %4577 = vmatprep.subr.bf16.mxu1 %v4576_v59  ;;  %v4771_v23 = vunpack.i.h.bf16 %v4769_v61  ;;  %v4770_v36 = vunpack.i.l.bf16 %v4769_v61 }
 0xdfd   :  { %4579 = vmatpush3.bf16.msra.mxu1 %v4576_v59 }
 0xdfe   :  { %v4580_v56 = vpack.c.bf16 %v4771_v23, %v4770_v36 }
 0xdff   :  { %v4774_v62 = vpop.permute.xlu1 %4773 }
 0xe00   :  { %v4776_v3 = vunpack.i.h.bf16 %v4774_v62  ;;  %v4775_v2 = vunpack.i.l.bf16 %v4774_v62 }
 0xe02   :  { %v4958_v63 = vpop.eup %4957  ;;  %v4586_v4 = vpack.c.bf16 %v4776_v3, %v4775_v2 }
 0xe03   :  { %v4960_v6 = vpop.eup %4959  ;;  %v2519_v7 = vsel %vm325_vm0, %v4958_v63, 0.0 }
 0xe04   :  { %2520 = vadd.xlane.f32.xlu1 %v2519_v7  ;;  %4588 = vmatprep.subr.msk.bf16.mxu1 %vm5206_vm1, %v4586_v4  ;;  %v2516_v14 = vsel %vm325_vm0, %v4960_v6, 0.0 }
 0xe05   :  { %v2500_v40 = vpop.xlane.xlu0 %2499  ;;  %2517 = vadd.xlane.f32.xlu0 %v2516_v14 }
 0xe06   :  { %v2506_v44 = vsub.f32 %v2483_v28, %v2500_v40 }
 0xe08   :  { %v2512_v17 = vmul.f32 1.442695, %v2506_v44 }
 0xe09   :  { %v2503_v33 = vpop.xlane.xlu0 %2502 }
 0xe0a   :  { %4961 = vpow2.f32 %v2512_v17  ;;  %v2507_v24 = vsub.f32 %v4287_v27, %v2503_v33 }
 0xe0c   :  { %v2514_v34 = vmul.f32 1.442695, %v2507_v24 }
 0xe0d   :  { %v4759_v35 = vpop.permute.xlu0 %4758 }
 0xe0e   :  { %4963 = vpow2.f32 %v2514_v34  ;;  %v4761_v53 = vunpack.i.h.bf16 %v4759_v35  ;;  %v4760_v47 = vunpack.i.l.bf16 %v4759_v35 }
 0xe10   :  { %v4572_v54 = vpack.c.bf16 %v4761_v53, %v4760_v47 }
 0xe12   :  { %4573 = vmatprep.subr.bf16.mxu0 %v4572_v54 }
 0xe13   :  { %4575 = vmatpush3.bf16.msra.mxu0 %v4572_v54 }
 0xe14   :  { %v4962_v58 = vpop.eup %4961  ;;  %4582 = vmatprep.subr.msk.bf16.mxu0 %vm5206_vm1, %v4580_v56 }
 0xe15   :  { %v2522_v28 = vsel %vm325_vm0, %v4962_v58, 0.0 }
 0xe16   :  { %2523 = vadd.xlane.f32.xlu0 %v2522_v28 }
 0xe18   :  { %v4964_v59 = vpop.eup %4963 }
 0xe19   :  { %v2525_v27 = vsel %vm325_vm0, %v4964_v59, 0.0 }
 0xe1a   :  { %2526 = vadd.xlane.f32.xlu1 %v2525_v27 }
 0xe2b   :  { %2712 = vrot.lane.b32.xlu1 %v5220_v45, %s5114_s23 }
 0xe2c   :  { %2710 = vrot.lane.b32.xlu0 %v5199_v0, %s5114_s23 }
 0xe2f   :  { %2803 = vrot.lane.b32.xlu1 %v5236_v55, %s5114_s23 }
 0xe30   :  { %2801 = vrot.lane.b32.xlu0 %v5222_v46, %s5114_s23 }
 0xe91   :  { %v2521_v61 = vpop.xlane.xlu1 %2520 }
 0xe92   :  { %4965 = vrcp.f32 %v2521_v61  ;;  %v2518_v62 = vpop.xlane.xlu0 %2517 }
 0xe93   :  { %4967 = vrcp.f32 %v2518_v62 }
 0xe9c   :  { %v4966_v3 = vpop.eup %4965 }
 0xe9d   :  { %v4968_v2 = vpop.eup %4967  ;;  %v2531_v14 = vmul.f32 %v4966_v3, %v4958_v63 }
 0xe9e   :  { %v2529_v7 = vmul.f32 %v4968_v2, %v4960_v6 }
 0xea0   :  { %4292 = vmatprep.mubr.msk.f32.mxu0 %vm325_vm0, %v2529_v7 }
 0xea1   :  { %4293 = vmatmul.mubr.msk.f32.vlgmr.msra.gmra.mrb[24].mxu0 %vm325_vm0, %v2531_v14 }
 0xea2   :  { %4585 = vmatpush3.bf16.xpose.msk.msra.mxu0 %vm5206_vm1, %v4580_v56 }
 0xea3   :  { %v2524_v40 = vpop.xlane.xlu0 %2523 }
 0xea4   :  { %4969 = vrcp.f32 %v2524_v40 }
 0xea7   :  { %v2527_v44 = vpop.xlane.xlu1 %2526  ;;  %v2711_v17 = vpop.permute.xlu0 %2710 }
 0xea8   :  { %4971 = vrcp.f32 %v2527_v44  ;;  %4306 = vmatprep.mubr.msk.f32.mxu0 %vm325_vm0, %v2711_v17 }
 0xeab   :  { %v2713_v33 = vpop.permute.xlu1 %2712  ;;  %v2802_v23 = vpop.permute.xlu0 %2801 }
 0xeac   :  { %4307 = vmatmul.mubr.msk.f32.vlgmr.msra.gmra.mrb[26].mxu0 %vm325_vm0, %v2713_v33 }
 0xeae   :  { %v4970_v24 = vpop.eup %4969 }
 0xeaf   :  { %v2533_v6 = vmul.f32 %v4970_v24, %v4962_v58  ;;  %v2804_v35 = vpop.permute.xlu1 %2803 }
 0xeb1   :  { %4299 = vmatprep.mubr.msk.f32.mxu1 %vm325_vm0, %v2533_v6 }
 0xeb2   :  { %v4972_v63 = vpop.eup %4971 }
 0xeb3   :  { %v2535_v34 = vmul.f32 %v4972_v63, %v4964_v59 }
 0xeb5   :  { %4300 = vmatmul.mubr.msk.f32.vlgmr.msra.gmra.mrb[32].mxu1 %vm325_vm0, %v2535_v34 }
 0xeb6   :  { %4591 = vmatpush3.bf16.xpose.msk.msra.mxu1 %vm5206_vm1, %v4586_v4  ;;  %4313 = vmatprep.mubr.msk.f32.mxu1 %vm325_vm0, %v2802_v23 }
 0xebd   :  { %4314 = vmatmul.mubr.msk.f32.vlgmr.msra.gmra.mrb[34].mxu1 %vm325_vm0, %v2804_v35 }
 0xf74   :  { %v5558_v36 = vpop.f32.mrb[24].mxu0 }
 0xf75   :  { %v5560_v53 = vpop.f32.mrb[25].mxu0 }
 0xf76   :  { %v4832_v47 = vpack.i.bf16 %v5558_v36, %v5560_v53  ;;  %v110_v36 = vld [vmem:[#allocation5 + $0x98] sm:$0xff] }
 0xf77   :  { %v111_v53 = vld [vmem:[#allocation5 + $0xb8] sm:$0xff] }
 0xf7f   :  { %v4308_v54 = vpop.f32.mrb[26].mxu0 }
 0xf80   :  { %v2792_v56 = vpop.f32.mrb[27].mxu0  ;;  %v2895_v58 = vsel %vm325_vm0, %v4308_v54, -inf }
 0xf81   :  { %2896 = vmax.xlane.f32.xlu1 %v2895_v58  ;;  %v2892_v28 = vsel %vm325_vm0, %v2792_v56, -inf }
 0xf82   :  { %2893 = vmax.xlane.f32.xlu0 %v2892_v28 }
 0xf88   :  { %v5566_v4 = vpop.f32.mrb[32].mxu1 }
 0xf89   :  { %v5568_v59 = vpop.f32.mrb[33].mxu1 }
 0xf8a   :  { %v4857_v27 = vpack.i.bf16 %v5566_v4, %v5568_v59  ;;  %v112_v4 = vld [vmem:[#allocation5 + $0xd8] sm:$0xff] }
 0xf8b   :  { %v113_v59 = vld [vmem:[#allocation5 + $0xf8] sm:$0xff] }
 0xf90   :  { %v4315_v61 = vpop.f32.mrb[34].mxu1 }
 0xf91   :  { %v2883_v62 = vpop.f32.mrb[35].mxu1  ;;  %v2901_v2 = vsel %vm325_vm0, %v4315_v61, -inf }
 0xf92   :  { %4783 = vrot.lane.b32.xlu1 %v5242_v57, %s5114_s23  ;;  %v2898_v3 = vsel %vm325_vm0, %v2883_v62, -inf }
 0xf93   :  { %2899 = vmax.xlane.f32.xlu0 %v2898_v3 }
 0xf96   :  { %4788 = vrot.lane.b32.xlu1 %v5210_v32, %s5125_s28 }
 0xf97   :  { %2902 = vmax.xlane.f32.xlu0 %v2901_v2 }
 0xf9a   :  { %4793 = vrot.lane.b32.xlu1 %v5226_v50, %s5125_s28 }
 0xfad   :  { %4778 = vrot.lane.b32.xlu0 %v5342_v9, %s5114_s23 }
0x100e   :  { %v2897_v7 = vpop.xlane.xlu1 %2896 }
0x100f   :  { %v2905_v14 = vsub.f32 %v4308_v54, %v2897_v7  ;;  %v2894_v40 = vpop.xlane.xlu0 %2893 }
0x1010   :  { %v2904_v44 = vsub.f32 %v2792_v56, %v2894_v40 }
0x1011   :  { %v2910_v17 = vmul.f32 1.442695, %v2905_v14 }
0x1012   :  { %v2908_v33 = vmul.f32 1.442695, %v2904_v44  ;;  %v4784_v24 = vpop.permute.xlu1 %4783 }
0x1013   :  { %4973 = vpow2.f32 %v2910_v17  ;;  %v4786_v6 = vunpack.i.h.bf16 %v4784_v24  ;;  %v4785_v63 = vunpack.i.l.bf16 %v4784_v24 }
0x1014   :  { %4975 = vpow2.f32 %v2908_v33 }
0x1015   :  { %v4596_v32 = vpack.c.bf16 %v4786_v6, %v4785_v63 }
0x1016   :  { %v4789_v34 = vpop.permute.xlu1 %4788 }
0x1017   :  { %4597 = vmatprep.subr.bf16.mxu1 %v4596_v32  ;;  %v4791_v33 = vunpack.i.h.bf16 %v4789_v34  ;;  %v4790_v6 = vunpack.i.l.bf16 %v4789_v34 }
0x1018   :  { %4599 = vmatpush3.bf16.msra.mxu1 %v4596_v32 }
0x101a   :  { %v4794_v23 = vpop.permute.xlu1 %4793 }
0x101b   :  { %v4796_v50 = vunpack.i.h.bf16 %v4794_v23  ;;  %v4795_v35 = vunpack.i.l.bf16 %v4794_v23 }
0x101d   :  { %v4974_v58 = vpop.eup %4973  ;;  %v4606_v28 = vpack.c.bf16 %v4796_v50, %v4795_v35  ;;  %v4600_v50 = vpack.c.bf16 %v4791_v33, %v4790_v6 }
0x101e   :  { %v4976_v3 = vpop.eup %4975  ;;  %v2919_v54 = vsel %vm325_vm0, %v4974_v58, 0.0 }
0x101f   :  { %2920 = vadd.xlane.f32.xlu1 %v2919_v54  ;;  %4608 = vmatprep.subr.msk.bf16.mxu1 %vm5206_vm1, %v4606_v28  ;;  %v2916_v56 = vsel %vm325_vm0, %v4976_v3, 0.0 }
0x1020   :  { %v2900_v2 = vpop.xlane.xlu0 %2899  ;;  %2917 = vadd.xlane.f32.xlu0 %v2916_v56 }
0x1021   :  { %v2906_v7 = vsub.f32 %v2883_v62, %v2900_v2 }
0x1023   :  { %v2912_v14 = vmul.f32 1.442695, %v2906_v7 }
0x1024   :  { %v2903_v40 = vpop.xlane.xlu0 %2902 }
0x1025   :  { %4977 = vpow2.f32 %v2912_v14  ;;  %v2907_v44 = vsub.f32 %v4315_v61, %v2903_v40 }
0x1027   :  { %v2914_v17 = vmul.f32 1.442695, %v2907_v44 }
0x1028   :  { %v4779_v24 = vpop.permute.xlu0 %4778 }
0x1029   :  { %4979 = vpow2.f32 %v2914_v17  ;;  %v4781_v63 = vunpack.i.h.bf16 %v4779_v24  ;;  %v4780_v32 = vunpack.i.l.bf16 %v4779_v24 }
0x102b   :  { %v4592_v23 = vpack.c.bf16 %v4781_v63, %v4780_v32 }
0x102d   :  { %4593 = vmatprep.subr.bf16.mxu0 %v4592_v23 }
0x102e   :  { %4595 = vmatpush3.bf16.msra.mxu0 %v4592_v23 }
0x102f   :  { %v4978_v35 = vpop.eup %4977  ;;  %4602 = vmatprep.subr.msk.bf16.mxu0 %vm5206_vm1, %v4600_v50 }
0x1030   :  { %v2922_v62 = vsel %vm325_vm0, %v4978_v35, 0.0 }
0x1031   :  { %2923 = vadd.xlane.f32.xlu0 %v2922_v62 }
0x1033   :  { %v4980_v54 = vpop.eup %4979 }
0x1034   :  { %v2925_v61 = vsel %vm325_vm0, %v4980_v54, 0.0 }
0x1035   :  { %2926 = vadd.xlane.f32.xlu1 %v2925_v61 }
0x1046   :  { %3112 = vrot.lane.b32.xlu1 %v5220_v45, %s5125_s28 }
0x1047   :  { %3110 = vrot.lane.b32.xlu0 %v5199_v0, %s5125_s28 }
0x104a   :  { %3203 = vrot.lane.b32.xlu1 %v5236_v55, %s5125_s28 }
0x104b   :  { %3201 = vrot.lane.b32.xlu0 %v5222_v46, %s5125_s28 }
0x10ac   :  { %v2921_v34 = vpop.xlane.xlu1 %2920 }
0x10ad   :  { %4981 = vrcp.f32 %v2921_v34  ;;  %v2918_v56 = vpop.xlane.xlu0 %2917 }
0x10ae   :  { %4983 = vrcp.f32 %v2918_v56 }
0x10b7   :  { %v4982_v2 = vpop.eup %4981 }
0x10b8   :  { %v4984_v7 = vpop.eup %4983  ;;  %v2931_v40 = vmul.f32 %v4982_v2, %v4974_v58 }
0x10b9   :  { %v2929_v14 = vmul.f32 %v4984_v7, %v4976_v3 }
0x10bb   :  { %4320 = vmatprep.mubr.msk.f32.mxu0 %vm325_vm0, %v2929_v14 }
0x10bc   :  { %4321 = vmatmul.mubr.msk.f32.vlgmr.msra.gmra.mrb[28].mxu0 %vm325_vm0, %v2931_v40 }
0x10bd   :  { %4605 = vmatpush3.bf16.xpose.msk.msra.mxu0 %vm5206_vm1, %v4600_v50 }
0x10be   :  { %v2924_v0 = vpop.xlane.xlu0 %2923 }
0x10bf   :  { %4985 = vrcp.f32 %v2924_v0 }
0x10c2   :  { %v2927_v45 = vpop.xlane.xlu1 %2926  ;;  %v3111_v55 = vpop.permute.xlu0 %3110 }
0x10c3   :  { %4987 = vrcp.f32 %v2927_v45  ;;  %4334 = vmatprep.mubr.msk.f32.mxu0 %vm325_vm0, %v3111_v55 }
0x10c6   :  { %v3113_v46 = vpop.permute.xlu1 %3112  ;;  %v3202_v33 = vpop.permute.xlu0 %3201 }
0x10c7   :  { %4335 = vmatmul.mubr.msk.f32.vlgmr.msra.gmra.mrb[30].mxu0 %vm325_vm0, %v3113_v46 }
0x10c9   :  { %v4986_v44 = vpop.eup %4985 }
0x10ca   :  { %v2933_v3 = vmul.f32 %v4986_v44, %v4978_v35  ;;  %v3204_v24 = vpop.permute.xlu1 %3203 }
0x10cc   :  { %4327 = vmatprep.mubr.msk.f32.mxu1 %vm325_vm0, %v2933_v3 }
0x10cd   :  { %v4988_v58 = vpop.eup %4987 }
0x10ce   :  { %v2935_v17 = vmul.f32 %v4988_v58, %v4980_v54 }
0x10d0   :  { %4328 = vmatmul.mubr.msk.f32.vlgmr.msra.gmra.mrb[36].mxu1 %vm325_vm0, %v2935_v17 }
0x10d1   :  { %4611 = vmatpush3.bf16.xpose.msk.msra.mxu1 %vm5206_vm1, %v4606_v28  ;;  %4341 = vmatprep.mubr.msk.f32.mxu1 %vm325_vm0, %v3202_v33 }
0x10d8   :  { %4342 = vmatmul.mubr.msk.f32.vlgmr.msra.gmra.mrb[38].mxu1 %vm325_vm0, %v3204_v24 }
0x118f   :  { %v4322_v6 = vpop.f32.mrb[28].mxu0 }
0x1190   :  { %v3014_v63 = vpop.f32.mrb[29].mxu0 }
0x1191   :  { %v4842_v32 = vpack.i.bf16 %v4322_v6, %v3014_v63 }
0x119a   :  { %v4336_v23 = vpop.f32.mrb[30].mxu0 }
0x119b   :  { %v3192_v50 = vpop.f32.mrb[31].mxu0  ;;  %v3295_v35 = vsel %vm325_vm0, %v4336_v23, -inf }
0x119c   :  { %3296 = vmax.xlane.f32.xlu1 %v3295_v35  ;;  %v3292_v62 = vsel %vm325_vm0, %v3192_v50, -inf }
0x119d   :  { %3293 = vmax.xlane.f32.xlu0 %v3292_v62 }
0x11a3   :  { %v4329_v54 = vpop.f32.mrb[36].mxu1 }
0x11a4   :  { %v3101_v61 = vpop.f32.mrb[37].mxu1 }
0x11a5   :  { %v4862_v29 = vpack.i.bf16 %v4329_v54, %v3101_v61  ;;  %v115_v61 = vld [vmem:[#allocation5 + $0x138] sm:$0xff] }
0x11ab   :  { %v4343_v28 = vpop.f32.mrb[38].mxu1 }
0x11ac   :  { %v3283_v34 = vpop.f32.mrb[39].mxu1  ;;  %v3301_v2 = vsel %vm325_vm0, %v4343_v28, -inf }
0x11ad   :  { %v3298_v56 = vsel %vm325_vm0, %v3283_v34, -inf }
0x11ae   :  { %3299 = vmax.xlane.f32.xlu0 %v3298_v56 }
0x11b2   :  { %3302 = vmax.xlane.f32.xlu0 %v3301_v2  ;;  %v118_v2 = vld [vmem:[#allocation5 + $0x198] sm:$0xff] }
0x1229   :  { %v3297_v7 = vpop.xlane.xlu1 %3296 }
0x122a   :  { %v3305_v14 = vsub.f32 %v4336_v23, %v3297_v7  ;;  %v3294_v40 = vpop.xlane.xlu0 %3293  ;;  %v119_v7 = vld [vmem:[#allocation5 + $0x1b8] sm:$0xff] }
0x122b   :  { %v3304_v0 = vsub.f32 %v3192_v50, %v3294_v40  ;;  %v120_v40 = vld [vmem:[#allocation5 + $0x1d8] sm:$0xff] }
0x122c   :  { %v3310_v45 = vmul.f32 1.442695, %v3305_v14  ;;  %v4644_v14 = vpack.c.bf16 %v119_v7, %v118_v2 }
0x122d   :  { %v3308_v55 = vmul.f32 1.442695, %v3304_v0  ;;  %v121_v0 = vld [vmem:[#allocation5 + $0x1f8] sm:$0xff] }
0x122e   :  { %4989 = vpow2.f32 %v3310_v45  ;;  %v4648_v45 = vpack.c.bf16 %v121_v0, %v120_v40 }
0x122f   :  { %4991 = vpow2.f32 %v3308_v55 }
0x1238   :  { %v4990_v46 = vpop.eup %4989 }
0x1239   :  { %v4992_v44 = vpop.eup %4991  ;;  %v3319_v3 = vsel %vm325_vm0, %v4990_v46, 0.0 }
0x123a   :  { %3320 = vadd.xlane.f32.xlu1 %v3319_v3  ;;  %v3316_v58 = vsel %vm325_vm0, %v4992_v44, 0.0 }
0x123b   :  { %v3300_v17 = vpop.xlane.xlu0 %3299  ;;  %3317 = vadd.xlane.f32.xlu0 %v3316_v58 }
0x123c   :  { %v3306_v33 = vsub.f32 %v3283_v34, %v3300_v17  ;;  %v117_v34 = vld [vmem:[#allocation5 + $0x178] sm:$0xff] }
0x123e   :  { %v3312_v24 = vmul.f32 1.442695, %v3306_v33 }
0x123f   :  { %v3303_v6 = vpop.xlane.xlu0 %3302 }
0x1240   :  { %4993 = vpow2.f32 %v3312_v24  ;;  %v3307_v63 = vsub.f32 %v4343_v28, %v3303_v6  ;;  %v116_v28 = vld [vmem:[#allocation5 + $0x158] sm:$0xff] }
0x1241   :  { %v4640_v56 = vpack.c.bf16 %v117_v34, %v116_v28 }
0x1242   :  { %v3314_v23 = vmul.f32 1.442695, %v3307_v63 }
0x1244   :  { %4995 = vpow2.f32 %v3314_v23 }
0x124a   :  { %v4994_v50 = vpop.eup %4993 }
0x124b   :  { %v3322_v35 = vsel %vm325_vm0, %v4994_v50, 0.0 }
0x124c   :  { %3323 = vadd.xlane.f32.xlu0 %v3322_v35 }
0x124e   :  { %v4996_v62 = vpop.eup %4995 }
0x124f   :  { %v3325_v54 = vsel %vm325_vm0, %v4996_v62, 0.0 }
0x1250   :  { %3326 = vadd.xlane.f32.xlu1 %v3325_v54 }
0x1261   :  { %4803 = vrot.lane.b32.xlu1 %v5242_v57, %s5125_s28 }
0x1262   :  { %4798 = vrot.lane.b32.xlu0 %v5342_v9, %s5125_s28 }
0x1265   :  { %4808 = vrot.lane.b32.xlu1 %v4807_v16, %s5125_s28 }
0x1266   :  { %4818 = vrot.lane.b32.xlu0 %v4817_v13, %s5124_s27 }
0x1269   :  { %4813 = vrot.lane.b32.xlu1 %v4812_v18, %s5114_s23 }
0x126a   :  { %4828 = vrot.lane.b32.xlu0 %v4827_v39, %s5125_s28 }
0x126d   :  { %4823 = vrot.lane.b32.xlu1 %v4822_v10, %s5123_s26  ;;  %v108_v10 = vld [vmem:[#allocation5 + $0x58] sm:$0xff] }
0x126e   :  { %4838 = vrot.lane.b32.xlu0 %v4837_v43, %s5114_s23  ;;  %s5126_s23 = smov [#allocation8]  }
0x126f   :  { %s3819_s29 = sshll.u32 %s5126_s23, 4  ;;  %s3820_s29 = int_to_ptr.vmem [resolvable:$true] %s3819_s29 }
0x1270   :  { %s5084_s30 = scalar_lea.vmem %s3820_s29, 512  ;;  %p5089_p11 = scmp.lt.s32.totalorder %s3820_s29, %s3820_s29 }
0x1271   :  { %4833 = vrot.lane.b32.xlu1 %v4832_v47, %s5122_s25  ;;  %v4628_v47 = vpack.c.bf16 %v111_v53, %v110_v36  ;;  %p5085_p10 = scmp.ne.s32.totalorder %s3820_s29, %s5084_s30  ;;  %p5090_p12 = scmp.lt.s32.totalorder %s5084_s30, %s5084_s30 }
0x1272   :  { %4848 = vrot.lane.b32.xlu0 %v4847_v20, %s5124_s27 }
0x1273   :  { %p5091_p13 = por %p5090_p12, %p5089_p11 }
0x1275   :  { %4843 = vrot.lane.b32.xlu1 %v4842_v32, %s5121_s24  ;;  %v114_v32 = vld [vmem:[#allocation5 + $0x118] sm:$0xff]  ;;  %p5092_p0 = pnand %p5091_p13, %p5085_p10 }
0x1276   :  { %4853 = vrot.lane.b32.xlu0 %v4852_v26, %s5123_s26  ;;  %v4624_v26 = vpack.c.bf16 %v109_v25, %v108_v10 }
0x1279   :  { %4858 = vrot.lane.b32.xlu1 %v4857_v27, %s5122_s25  ;;  %v4632_v27 = vpack.c.bf16 %v113_v59, %v112_v4 }
0x127a   :  { %4863 = vrot.lane.b32.xlu0 %v4862_v29, %s5121_s24  ;;  %v4636_v29 = vpack.c.bf16 %v115_v61, %v114_v32 }
0x12c7   :  { %v3321_v38 = vpop.xlane.xlu1 %3320 }
0x12c8   :  { %v3318_v57 = vpop.xlane.xlu0 %3317 }
0x12c9   :  { %4997 = vrcp.f32 %v3318_v57 }
0x12ca   :  { %4999 = vrcp.f32 %v3321_v38 }
0x12d3   :  { %v4998_v37 = vpop.eup %4997 }
0x12d4   :  { %v3329_v39 = vmul.f32 %v4998_v37, %v4992_v44  ;;  %v5000_v18 = vpop.eup %4999 }
0x12d5   :  { %v3331_v60 = vmul.f32 %v5000_v18, %v4990_v46 }
0x12d6   :  { %4348 = vmatprep.mubr.msk.f32.mxu0 %vm325_vm0, %v3329_v39 }
0x12d9   :  { %v3324_v9 = vpop.xlane.xlu0 %3323 }
0x12da   :  { %5001 = vrcp.f32 %v3324_v9 }
0x12dd   :  { %v3327_v21 = vpop.xlane.xlu1 %3326  ;;  %v4799_v22 = vpop.permute.xlu0 %4798 }
0x12de   :  { %5003 = vrcp.f32 %v3327_v21  ;;  %v4801_v16 = vunpack.i.h.bf16 %v4799_v22  ;;  %v4800_v30 = vunpack.i.l.bf16 %v4799_v22 }
0x12e0   :  { %v4612_v31 = vpack.c.bf16 %v4801_v16, %v4800_v30 }
0x12e1   :  { %v4804_v41 = vpop.permute.xlu1 %4803  ;;  %v4819_v24 = vpop.permute.xlu0 %4818 }
0x12e2   :  { %v4806_v42 = vunpack.i.h.bf16 %v4804_v41  ;;  %v4805_v43 = vunpack.i.l.bf16 %v4804_v41  ;;  %4613 = vmatprep.subr.bf16.mxu0 %v4612_v31  ;;  %v4820_v41 = vunpack.i.l.bf16 %v4819_v24 }
0x12e3   :  { %4615 = vmatpush3.bf16.msra.mxu0 %v4612_v31  ;;  %v4821_v31 = vunpack.i.h.bf16 %v4819_v24 }
0x12e4   :  { %v5002_v11 = vpop.eup %5001  ;;  %v4616_v13 = vpack.c.bf16 %v4806_v42, %v4805_v43  ;;  %4621 = vmatprep.subr.bf16.mxu0 %v4620_v1 }
0x12e5   :  { %v3333_v12 = vmul.f32 %v5002_v11, %v4994_v50  ;;  %v4809_v33 = vpop.permute.xlu1 %4808  ;;  %v4829_v63 = vpop.permute.xlu0 %4828 }
0x12e6   :  { %4349 = vmatmul.mubr.msk.f32.vlgmr.msra.gmra.mrb[32].mxu0 %vm325_vm0, %v3331_v60  ;;  %4617 = vmatprep.subr.bf16.mxu1 %v4616_v13  ;;  %v4811_v38 = vunpack.i.h.bf16 %v4809_v33  ;;  %v4830_v39 = vunpack.i.l.bf16 %v4829_v63  ;;  %v4831_v9 = vunpack.i.h.bf16 %v4829_v63 }
0x12e7   :  { %4619 = vmatpush3.bf16.msra.mxu1 %v4616_v13  ;;  %4355 = vmatprep.mubr.msk.f32.mxu1 %vm325_vm0, %v3333_v12 }
0x12e8   :  { %v5004_v19 = vpop.eup %5003  ;;  %4623 = vmatpush3.bf16.msra.mxu0 %v4620_v1  ;;  %v3623_v42 = vsel %vm325_vm0, %v5270_v48, %v4811_v38  ;;  %v3624_v43 = vsel %vm325_vm0, %v5276_v52, %v4830_v39  ;;  %v3625_v60 = vsel %vm325_vm0, %v5274_v51, %v4831_v9 }
0x12e9   :  { %v3335_v20 = vmul.f32 %v5004_v19, %v4996_v62  ;;  %4625 = vmatprep.subr.bf16.mxu0 %v4624_v26  ;;  %v4814_v6 = vpop.permute.xlu1 %4813  ;;  %v4839_v50 = vpop.permute.xlu0 %4838  ;;  %v4810_v62 = vunpack.i.l.bf16 %v4809_v33 }
0x12ea   :  { %v4815_v54 = vunpack.i.l.bf16 %v4814_v6  ;;  %v4816_v21 = vunpack.i.h.bf16 %v4814_v6  ;;  %v4840_v22 = vunpack.i.l.bf16 %v4839_v50  ;;  %v4841_v30 = vunpack.i.h.bf16 %v4839_v50 }
0x12eb   :  { %4356 = vmatmul.mubr.msk.f32.vlgmr.msra.gmra.mrb[40].mxu1 %vm325_vm0, %v3335_v20  ;;  %v3622_v16 = vsel %vm325_vm0, %v5272_v49, %v4810_v62  ;;  %v3658_v62 = vsub.s32 3, %v5195_v15 }
0x12ec   :  { %4627 = vmatpush3.bf16.msra.mxu0 %v4624_v26  ;;  %v3627_v18 = vsel %vm3626_vm2, %v3622_v16, %v4815_v54  ;;  %v3628_v49 = vsel %vm3626_vm2, %v3623_v42, %v4816_v21  ;;  %v3629_v13 = vsel %vm3626_vm2, %v3624_v43, %v4840_v22  ;;  %v3630_v8 = vsel %vm3626_vm2, %v3625_v60, %v4841_v30  ;;  %v5703_v54 = vld [vmem:[#allocation7] sm:$0x3f]  ;;  %v5014_v21 = vld [vmem:[#allocation2 + $0x8] sm:$0xff]  ;;  %v5016_v43 = vld [vmem:[#allocation2 + $0x10] sm:$0xff] }
0x12ed   :  { %4629 = vmatprep.subr.bf16.mxu0 %v4628_v47  ;;  %v4824_v23 = vpop.permute.xlu1 %4823  ;;  %v4849_v57 = vpop.permute.xlu0 %4848  ;;  %v3632_v5 = vsel %vm3631_vm3, %v3627_v18, %v4820_v41  ;;  %v3633_v36 = vsel %vm3631_vm3, %v3628_v49, %v4821_v31  ;;  %v5015_v16 = vld [vmem:[#allocation2] sm:$0xff]  ;;  %v5017_v60 = vld [vmem:[#allocation2 + $0x18] sm:$0xff] }
0x12ee   :  { %v4825_v11 = vunpack.i.l.bf16 %v4824_v23  ;;  %v4826_v12 = vunpack.i.h.bf16 %v4824_v23  ;;  %v4851_v1 = vunpack.i.h.bf16 %v4849_v57  ;;  %v4850_v25 = vunpack.i.l.bf16 %v4849_v57 }
0x12ef   :  { %v3659_v57 = vrot.slane %v5703_v54, %v3658_v62 }
0x12f0   :  { %4631 = vmatpush3.bf16.msra.mxu0 %v4628_v47  ;;  %v3637_v51 = vsel %vm3636_vm4, %v3632_v5, %v4825_v11  ;;  %v3638_v4 = vsel %vm3636_vm4, %v3633_v36, %v4826_v12  ;;  %v3635_v2 = vsel %vm3631_vm3, %v3630_v8, %v4851_v1 }
0x12f1   :  { %4633 = vmatprep.subr.bf16.mxu0 %v4632_v27  ;;  %v4834_v35 = vpop.permute.xlu1 %4833  ;;  %v4854_v19 = vpop.permute.xlu0 %4853 }
0x12f2   :  { %v4836_v10 = vunpack.i.h.bf16 %v4834_v35  ;;  %v4835_v48 = vunpack.i.l.bf16 %v4834_v35  ;;  %v4856_v53 = vunpack.i.h.bf16 %v4854_v19  ;;  %v4855_v47 = vunpack.i.l.bf16 %v4854_v19 }
0x12f4   :  { %4635 = vmatpush3.bf16.msra.mxu0 %v4632_v27  ;;  %v3643_v61 = vsel %vm3641_vm5, %v3638_v4, %v4836_v10  ;;  %v3642_v34 = vsel %vm3641_vm5, %v3637_v51, %v4835_v48 }
0x12f5   :  { %4637 = vmatprep.subr.bf16.mxu0 %v4636_v29  ;;  %v4844_v37 = vpop.permute.xlu1 %4843  ;;  %v4864_v7 = vpop.permute.xlu0 %4863 }
0x12f6   :  { %v4846_v52 = vunpack.i.h.bf16 %v4844_v37  ;;  %v4845_v26 = vunpack.i.l.bf16 %v4844_v37 }
0x12f8   :  { %4639 = vmatpush3.bf16.msra.mxu0 %v4636_v29  ;;  %v3648_v40 = vsel %vm3646_vm6, %v3643_v61, %v4846_v52 }
0x12f9   :  { %4641 = vmatprep.subr.bf16.mxu0 %v4640_v56  ;;  %v4859_v20 = vpop.permute.xlu1 %4858 }
0x12fa   :  { %v4861_v59 = vunpack.i.h.bf16 %v4859_v20  ;;  %v4860_v27 = vunpack.i.l.bf16 %v4859_v20 }
0x12fc   :  { %4643 = vmatpush3.bf16.msra.mxu0 %v4640_v56  ;;  %v3634_v56 = vsel %vm3631_vm3, %v3629_v13, %v4850_v25 }
0x12fd   :  { %4645 = vmatprep.subr.bf16.mxu0 %v4644_v14  ;;  %v3639_v0 = vsel %vm3636_vm4, %v3634_v56, %v4855_v47 }
0x1300   :  { %4647 = vmatpush3.bf16.msra.mxu0 %v4644_v14  ;;  %v3647_v14 = vsel %vm3646_vm6, %v3642_v34, %v4845_v26 }
0x1301   :  { %4649 = vmatprep.subr.bf16.mxu0 %v4648_v45 }
0x1304   :  { %4651 = vmatpush3.bf16.msra.mxu0 %v4648_v45  ;;  %v3640_v45 = vsel %vm3636_vm4, %v3635_v2, %v4856_v53 }
0x13b9   :  { %v4350_v55 = vpop.f32.mrb[32].mxu0 }
0x13ba   :  { %v3414_v46 = vpop.f32.mrb[33].mxu0 }
0x13bb   :  { %v4867_v44 = vpack.i.bf16 %v4350_v55, %v3414_v46 }
0x13bd   :  { %4868 = vrot.lane.b32.xlu1 %v4867_v44, %s5120_s2  ;;  %v3644_v44 = vsel %vm3641_vm5, %v3639_v0, %v4860_v27 }
0x13be   :  { %v4357_v3 = vpop.f32.mrb[40].mxu1 }
0x13bf   :  { %v3501_v58 = vpop.f32.mrb[41].mxu1 }
0x13c0   :  { %v4872_v17 = vpack.i.bf16 %v4357_v3, %v3501_v58  ;;  %v3645_v3 = vsel %vm3641_vm5, %v3640_v45, %v4861_v59  ;;  %v4866_v58 = vunpack.i.h.bf16 %v4864_v7 }
0x13c2   :  { %4873 = vrot.lane.b32.xlu1 %v4872_v17, %s5120_s2  ;;  %v4865_v17 = vunpack.i.l.bf16 %v4864_v7  ;;  %v3650_v23 = vsel %vm3646_vm6, %v3645_v3, %v4866_v58  ;;  %v3796_v7 = vsub.s32 4, %v5195_v15 }
0x13c4   :  { %v3649_v63 = vsel %vm3646_vm6, %v3644_v44, %v4865_v17  ;;  %v3797_v45 = vrot.slane %v5703_v54, %v3796_v7 }
0x142f   :  { %v4869_v32 = vpop.permute.xlu1 %4868 }
0x1430   :  { %v4871_v29 = vunpack.i.h.bf16 %v4869_v32  ;;  %v4870_v28 = vunpack.i.l.bf16 %v4869_v32 }
0x1432   :  { %v3652_v55 = vsel %vm3651_vm7, %v3647_v14, %v4870_v28  ;;  %v3653_v46 = vsel %vm3651_vm7, %v3648_v40, %v4871_v29  ;;  %v3804_v40 = vsub.s32 5, %v5195_v15 }
0x1433   :  { %4390 = vmatprep.mubr.f32.mxu0 %v3652_v55 }
0x1434   :  { %v4874_v33 = vpop.permute.xlu1 %4873  ;;  %4391 = vmatmul.mubr.f32.vlgmr.msra.gmra.mrb[34].mxu0 %v3653_v46  ;;  %v3805_v3 = vrot.slane %v5703_v54, %v3804_v40 }
0x1435   :  { %v4876_v24 = vunpack.i.h.bf16 %v4874_v33  ;;  %v4875_v6 = vunpack.i.l.bf16 %v4874_v33 }
0x1437   :  { %v3654_v50 = vsel %vm3651_vm7, %v3649_v63, %v4875_v6  ;;  %v3655_v35 = vsel %vm3651_vm7, %v3650_v23, %v4876_v24 }
0x1438   :  { %4393 = vmatprep.mubr.f32.mxu0 %v3654_v50 }
0x1439   :  { %4394 = vmatmul.mubr.f32.gmra.mrb[36].mxu0 %v3655_v35 }
0x1507   :  { %v4392_v37 = vpop.f32.mrb[34].mxu0 }
0x1508   :  { %v3732_v38 = vadd.f32 %v4392_v37, %v3659_v57  ;;  %v3726_v39 = vpop.f32.mrb[35].mxu0 }
0x1509   :  { %v3727_v9 = vadd.f32 %v3726_v39, %v3659_v57 }
0x150a   :  { %v3746_v22 = vadd.f32 %v5014_v21, %v3732_v38 }
0x150b   :  { %v3745_v30 = vadd.f32 %v5015_v16, %v3727_v9 }
0x150c   :  { %3751 = vadd.xlane.f32.xlu1 %v3746_v22  ;;  %v4395_v31 = vpop.f32.mrb[36].mxu0 }
0x150d   :  { %v3736_v18 = vpop.f32.mrb[37].mxu0  ;;  %3749 = vadd.xlane.f32.xlu0 %v3745_v30  ;;  %v3742_v42 = vadd.f32 %v4395_v31, %v3659_v57 }
0x150e   :  { %v3737_v41 = vadd.f32 %v3736_v18, %v3659_v57 }
0x150f   :  { %v3748_v49 = vadd.f32 %v5017_v60, %v3742_v42 }
0x1510   :  { %v3747_v11 = vadd.f32 %v5016_v43, %v3737_v41 }
0x1512   :  { %3753 = vadd.xlane.f32.xlu0 %v3747_v11 }
0x1516   :  { %3755 = vadd.xlane.f32.xlu0 %v3748_v49 }
0x1599   :  { %v3752_v13 = vpop.xlane.xlu1 %3751 }
0x159a   :  { %v3759_v12 = vmul.f32 0.0078125, %v3752_v13  ;;  %v3750_v19 = vpop.xlane.xlu0 %3749 }
0x159b   :  { %v3758_v20 = vmul.f32 0.0078125, %v3750_v19 }
0x159c   :  { %v3763_v8 = vsub.f32 %v3746_v22, %v3759_v12 }
0x159d   :  { %v3762_v5 = vsub.f32 %v3745_v30, %v3758_v20 }
0x159e   :  { %v3767_v10 = vmul.f32 %v3763_v8, %v3763_v8 }
0x159f   :  { %v3754_v48 = vpop.xlane.xlu0 %3753  ;;  %v3766_v1 = vmul.f32 %v3762_v5, %v3762_v5 }
0x15a0   :  { %v3760_v25 = vmul.f32 0.0078125, %v3754_v48  ;;  %3772 = vadd.xlane.f32.xlu1 %v3767_v10 }
0x15a1   :  { %3770 = vadd.xlane.f32.xlu0 %v3766_v1 }
0x15a2   :  { %v3764_v52 = vsub.f32 %v3747_v11, %v3760_v25 }
0x15a3   :  { %v3756_v26 = vpop.xlane.xlu0 %3755 }
0x15a4   :  { %v3761_v36 = vmul.f32 0.0078125, %v3756_v26  ;;  %v3768_v51 = vmul.f32 %v3764_v52, %v3764_v52 }
0x15a6   :  { %v3765_v53 = vsub.f32 %v3748_v49, %v3761_v36  ;;  %3774 = vadd.xlane.f32.xlu0 %v3768_v51 }
0x15a8   :  { %v3769_v47 = vmul.f32 %v3765_v53, %v3765_v53 }
0x15aa   :  { %3776 = vadd.xlane.f32.xlu1 %v3769_v47 }
0x162d   :  { %v3773_v4 = vpop.xlane.xlu1 %3772 }
0x162e   :  { %v3779_v59 = vmul.f32 0.0078125, %v3773_v4  ;;  %v3771_v27 = vpop.xlane.xlu0 %3770 }
0x162f   :  { %v3778_v32 = vmul.f32 0.0078125, %v3771_v27 }
0x1630   :  { %v3783_v61 = vadd.f32 1e-05, %v3779_v59 }
0x1631   :  { %v3782_v29 = vadd.f32 1e-05, %v3778_v32 }
0x1632   :  { %5005 = vrsqrt.f32 %v3783_v61 }
0x1633   :  { %5007 = vrsqrt.f32 %v3782_v29  ;;  %v3775_v28 = vpop.xlane.xlu0 %3774 }
0x1634   :  { %v3780_v34 = vmul.f32 0.0078125, %v3775_v28 }
0x1636   :  { %v3784_v56 = vadd.f32 1e-05, %v3780_v34 }
0x1637   :  { %v3777_v2 = vpop.xlane.xlu1 %3776 }
0x1638   :  { %5009 = vrsqrt.f32 %v3784_v56  ;;  %v3781_v14 = vmul.f32 0.0078125, %v3777_v2 }
0x163a   :  { %v3785_v0 = vadd.f32 1e-05, %v3781_v14 }
0x163c   :  { %v5006_v55 = vpop.eup %5005  ;;  %5011 = vrsqrt.f32 %v3785_v0 }
0x163d   :  { %v5008_v46 = vpop.eup %5007  ;;  %v3791_v44 = vmul.f32 %v5006_v55, %v3763_v8 }
0x163e   :  { %v3790_v58 = vmul.f32 %v5008_v46, %v3762_v5 }
0x163f   :  { %v3799_v17 = vmul.f32 %v3797_v45, %v3791_v44 }
0x1640   :  { %v3798_v33 = vmul.f32 %v3797_v45, %v3790_v58 }
0x1641   :  { %v3807_v24 = vadd.f32 %v3805_v3, %v3799_v17 }
0x1642   :  { %v5010_v6 = vpop.eup %5009  ;;  %v3806_v63 = vadd.f32 %v3805_v3, %v3798_v33 }
0x1643   :  { %v3792_v23 = vmul.f32 %v5010_v6, %v3764_v52  ;;  %3811 = vst [vmem:[#allocation8 + $0x8] sm:$0xff] %v3807_v24 }
0x1644   :  { %3810 = vst [vmem:[#allocation8] sm:$0xff] %v3806_v63 }
0x1645   :  { %v3800_v50 = vmul.f32 %v3797_v45, %v3792_v23 }
0x1646   :  { %v5012_v15 = vpop.eup %5011 }
0x1647   :  { %v3793_v35 = vmul.f32 %v5012_v15, %v3765_v53  ;;  %v3808_v62 = vadd.f32 %v3805_v3, %v3800_v50 }
0x1649   :  { %v3801_v57 = vmul.f32 %v3797_v45, %v3793_v35  ;;  %3812 = vst [vmem:[#allocation8 + $0x10] sm:$0xff] %v3808_v62 }
0x164b   :  { %v3809_v37 = vadd.f32 %v3805_v3, %v3801_v57 }
0x164d   :  { %3813 = vst [vmem:[#allocation8 + $0x18] sm:$0xff] %v3809_v37 }
0x164e   :  { %5095 = shalt.err (!%p5092_p0)
}
0x164f   :  { %s5096_s6 = scalar_lea.hbm %s5728_s3, 512 }
0x1650   :  { %p5097_p1 = scmp.ne.s32.totalorder %s5728_s3, %s5096_s6  ;;  %p5100_p2 = scmp.lt.u32.totalorder %s5096_s6, %s5728_s3 }
0x1652   :  { %p5102_p3 = pnand %p5100_p2, %p5097_p1 }
0x1654   :  { %5105 = shalt.err (!%p5102_p3)
}
0x1655   :  { %3825 = dma.vmem_to_hbm [thread:$0]  %s3820_s29, 512, %s5728_s3, [#allocation4], %s5116_s1, %s5116_s1, %s5117_s9  }
0x1656   :  { %5110 = dma.done.wait [#allocation4], 512  }
0x1657   :  { %5111 = vsyncadd [#allocation4], 4294966784 }
0x1658   :  { %3829 = vsyncpa [#allocation3], 1 }
0x1659   :  { %3830 = vsyncpa [#allocation6], 1 }
0x165a   :  { %3831 = vsyncpa [#allocation4], 1 }

</bundles_post_ra>
